<compile_context>
chip_gen: v7x
topology: tpu7x:2x2x1
jax: 0.10.0
libtpu: 0.0.40
codegen_flags: <defaults>
</compile_context>

<pallas_src>
import functools

import jax
import jax.numpy as jnp
from jax import lax
from jax.experimental import pallas as pl
from jax.experimental.pallas import tpu as pltpu


# ---------------------------------------------------------------------------
# Pallas kernels: branch-batched GEMM + bias (+ReLU)
# ---------------------------------------------------------------------------
def _gemm_bias_kernel(x_ref, w_ref, b_ref, o_ref, *, relu):
    """Single-K-tile specialization: y = act(x @ w + b), no scratch."""
    y = jnp.dot(x_ref[0], w_ref[0], preferred_element_type=jnp.float32)
    y = y + b_ref[0].astype(jnp.float32)
    if relu:
        y = jnp.maximum(y, 0.0)
    o_ref[0] = y.astype(o_ref.dtype)


def _gemm_bias_acc_kernel(x_ref, w_ref, b_ref, o_ref, acc_ref, *, relu, n_k):
    """K-tiled accumulation path (K > 2048): f32 VMEM accumulator."""

    @pl.when(pl.program_id(3) == 0)
    def _init():
        acc_ref[...] = jnp.zeros_like(acc_ref)

    acc_ref[...] += jnp.dot(x_ref[0], w_ref[0],
                            preferred_element_type=jnp.float32)

    @pl.when(pl.program_id(3) == n_k - 1)
    def _finalize():
        y = acc_ref[...] + b_ref[0].astype(jnp.float32)
        if relu:
            y = jnp.maximum(y, 0.0)
        o_ref[0] = y.astype(o_ref.dtype)


def _round_up(x, m):
    return ((x + m - 1) // m) * m


@functools.lru_cache(maxsize=None)
def _vmem_limit_bytes():
    """Chip-aware scoped-VMEM limit: ~3/4 of physical, capped at 96 MiB."""
    try:
        phys = int(pltpu.get_tpu_info().vmem_capacity_bytes)
    except Exception:
        phys = 64 * 1024 * 1024          # conservative (v7x-sized) fallback
    return min(96 * 1024 * 1024, (3 * phys) // 4)


def _pick_bk(K):
    """K tile: full K up to 2048, else the largest multiple of 128 dividing K."""
    if K <= 2048:
        return K
    for bk in range(2048, 0, -128):
        if K % bk == 0:
            return bk
    return K


def _pick_bn(N, bk, budget):
    """Prefer the full N (one weight tile, e.g. dec_dense) when it fits."""
    if N <= 512 or 4 * bk * N <= (3 * budget) // 10:
        return N
    for bn in range(min(N, 4096), 0, -128):
        if N % bn == 0 and 4 * bk * bn <= (3 * budget) // 10:
            return bn
    return N


def _plan_m(M, bk, bn, kt, out_bytes, budget, want_two):
    """VMEM-budget-driven M tiling with equalized tiles (minimal padding)."""
    per_row = 4 * bk + 2 * out_bytes * bn + (4 * bn if kt > 1 else 0)
    avail = budget - (4 * bk * bn + 8 * bn)
    bm_cap = max(8, avail // per_row)
    bm_cap = max(8, (bm_cap // 8) * 8)
    mt = max(1, -(-M // bm_cap))
    if want_two and mt < 2 and M >= 16:
        mt = 2                             # keep both v7x TensorCores busy
    if M % mt == 0 and (M // mt) % 8 == 0:
        bm = M // mt                       # exact split: no host-side pad
    else:
        bm = _round_up(-(-M // mt), 8)
    return mt, bm, mt * bm


def fused_gemm(x, w, b, *, relu, out_dtype=jnp.bfloat16):
    """y[g] = act(x[g] @ w[g] + b[g]) for g in range(G).

    x: (G, M, K) float; w: (G, K, N) bf16; b: (G, N) f32.
    """
    G, M, K = x.shape
    Gw, Kw, N = w.shape
    assert Gw == G and Kw == K

    x = x.astype(jnp.bfloat16)
    w = w.astype(jnp.bfloat16)
    b = b.astype(jnp.float32)

    # Lane-dense output: N < 128 would force masked vst.msk partial stores;
    # zero-pad the weight columns to a full 128-lane tile and slice after.
    N_real = N
    if N < 128:
        w = jnp.pad(w, ((0, 0), (0, 0), (0, 128 - N)))
        b = jnp.pad(b, ((0, 0), (0, 128 - N)))
        N = 128

    limit = _vmem_limit_bytes()
    budget = limit // 2                    # headroom for Mosaic internals
    out_bytes = jnp.dtype(out_dtype).itemsize

    bk = _pick_bk(K)
    kt = K // bk
    bn = _pick_bn(N, bk, budget)
    nt = N // bn
    mt, bm, M_pad = _plan_m(M, bk, bn, kt, out_bytes, budget,
                            want_two=(G == 1))
    if M_pad != M:
        x = jnp.pad(x, ((0, 0), (0, M_pad - M), (0, 0)))

    b3 = b.reshape(G, 1, N)
    sem = ("parallel", "parallel", "parallel")
    if kt > 1:
        sem = sem + ("arbitrary",)
    cparams = pltpu.CompilerParams(dimension_semantics=sem,
                                   vmem_limit_bytes=limit)

    if kt == 1:
        out = pl.pallas_call(
            functools.partial(_gemm_bias_kernel, relu=relu),
            out_shape=jax.ShapeDtypeStruct((G, M_pad, N), out_dtype),
            grid=(G, mt, nt),
            in_specs=[
                pl.BlockSpec((1, bm, bk), lambda g, i, j: (g, i, 0)),
                pl.BlockSpec((1, bk, bn), lambda g, i, j: (g, 0, j)),
                pl.BlockSpec((1, 1, bn), lambda g, i, j: (g, 0, j)),
            ],
            out_specs=pl.BlockSpec((1, bm, bn), lambda g, i, j: (g, i, j)),
            compiler_params=cparams,
        )(x, w, b3)
    else:
        out = pl.pallas_call(
            functools.partial(_gemm_bias_acc_kernel, relu=relu, n_k=kt),
            out_shape=jax.ShapeDtypeStruct((G, M_pad, N), out_dtype),
            grid=(G, mt, nt, kt),
            in_specs=[
                pl.BlockSpec((1, bm, bk), lambda g, i, j, kk: (g, i, kk)),
                pl.BlockSpec((1, bk, bn), lambda g, i, j, kk: (g, kk, j)),
                pl.BlockSpec((1, 1, bn), lambda g, i, j, kk: (g, 0, j)),
            ],
            out_specs=pl.BlockSpec((1, bm, bn), lambda g, i, j, kk: (g, i, j)),
            scratch_shapes=[pltpu.VMEM((bm, bn), jnp.float32)],
            compiler_params=cparams,
        )(x, w, b3)

    if M_pad != M or N_real != N:
        out = out[:, :M, :N_real]
    return out


# ---------------------------------------------------------------------------
# Conv / ConvTranspose wrappers (NHWC, branch-stacked)
# ---------------------------------------------------------------------------
def _extract_patches(x, k, stride):
    """im2col on stacked NHWC input: (G,B,H,W,C) -> (G, B*Ho*Wo, k*k*C).

    Tap ordering (kh, kw, c) matches the packed weight layout.
    TODO(synk): replace with an implicit-GEMM Pallas kernel (in-kernel tap
    loop over the padded NHWC input) to avoid the k^2-duplicated HBM traffic.
    """
    G, B, H, W, C = x.shape
    Ho = (H - k) // stride + 1
    Wo = (W - k) // stride + 1
    taps = []
    for kh in range(k):
        for kw in range(k):
            taps.append(x[:, :, kh:kh + stride * (Ho - 1) + 1:stride,
                          kw:kw + stride * (Wo - 1) + 1:stride, :])
    cols = jnp.concatenate(taps, axis=-1)
    return cols.reshape(G, B * Ho * Wo, k * k * C), Ho, Wo


def spma_conv(x, wmat, bias, *, k, stride, pad, relu, out_dtype=jnp.bfloat16):
    """IcoSpMaConv (= ZeroPad2d(pad) -> Conv2d(k, stride)) on stacked NHWC."""
    G, B = x.shape[0], x.shape[1]
    if pad:
        x = jnp.pad(x, ((0, 0), (0, 0), (pad, pad), (pad, pad), (0, 0)))
    cols, Ho, Wo = _extract_patches(x, k, stride)
    y = fused_gemm(cols, wmat, bias, relu=relu, out_dtype=out_dtype)
    return y.reshape(G, B, Ho, Wo, -1)


def spma_conv_transpose(x, wmat, bias, *, k, pad, zero_pad, relu,
                        out_dtype=jnp.bfloat16):
    """IcoSpMaConvTranspose (= ZeroPad2d(pad) -> ConvTranspose2d(k, stride=2,
    padding=zero_pad)) via pixel-shuffle: the 4 output phases are 4 stride-1
    (k/2)x(k/2) sub-convs sharing a single im2col, fused along N (= 4*Cout)."""
    G, B = x.shape[0], x.shape[1]
    k2 = k // 2
    p = pad + k2 - 1                       # module pre-pad + phase halo
    if p:
        x = jnp.pad(x, ((0, 0), (0, 0), (p, p), (p, p), (0, 0)))
    cols, Hq, Wq = _extract_patches(x, k2, 1)
    y = fused_gemm(cols, wmat, bias, relu=relu, out_dtype=out_dtype)
    cout = y.shape[-1] // 4
    y = y.reshape(G, B, Hq, Wq, 2, 2, cout)            # (..., rh, rw, cout)
    y = y.transpose(0, 1, 2, 4, 3, 5, 6).reshape(G, B, 2 * Hq, 2 * Wq, cout)
    zp = zero_pad
    return y[:, :, zp:2 * Hq - zp, zp:2 * Wq - zp, :]


# ---------------------------------------------------------------------------
# Parameter construction (mirrors SphericalGVAE.__init__) + one-time packing
# ---------------------------------------------------------------------------
def _conv_w(key, cout, cin, k):
    bound = 1.0 / float(cin * k * k) ** 0.5
    kw, kb = jax.random.split(key)
    w = jax.random.uniform(kw, (cout, cin, k, k), jnp.float32, -bound, bound)
    b = jax.random.uniform(kb, (cout,), jnp.float32, -bound, bound)
    return w, b


def _tconv_w(key, cin, cout, k):
    bound = 1.0 / float(cout * k * k) ** 0.5
    kw, kb = jax.random.split(key)
    w = jax.random.uniform(kw, (cin, cout, k, k), jnp.float32, -bound, bound)
    b = jax.random.uniform(kb, (cout,), jnp.float32, -bound, bound)
    return w, b


def _linear_w(key, in_f, out_f):
    bound = 1.0 / float(in_f) ** 0.5
    kw, kb = jax.random.split(key)
    w = jax.random.uniform(kw, (in_f, out_f), jnp.float32, -bound, bound)
    b = jax.random.uniform(kb, (out_f,), jnp.float32, -bound, bound)
    return w, b


def init_spherical_gvae(key, input_channels=1, input_dim=192, latent_dim=64,
                        conv_flts=(64, 128, 128, 256, 256), fusion_level=1):
    n_layers = len(conv_flts)
    if fusion_level > n_layers or fusion_level <= 0:
        raise ValueError("bad fusion level")
    top_flatten_dim = input_dim // (2 ** n_layers)
    top_final = conv_flts[-1] * top_flatten_dim ** 2
    keys = iter(jax.random.split(key, 4 * n_layers + 4))

    enc_left, enc_right, enc_w = [], [], []
    multi_path, in_ch = True, input_channels
    for idx in range(n_layers):
        if idx == fusion_level:
            multi_path = False
            in_ch *= 2
        if multi_path:
            out_ch = conv_flts[idx] // 2
            k, pad = (8, 3) if idx == 0 else (4, 1)
            w, b = _conv_w(next(keys), out_ch, in_ch, k)
            enc_left.append(dict(w=w, b=b, k=k, stride=2, pad=pad))
            w, b = _conv_w(next(keys), out_ch, in_ch, k)
            enc_right.append(dict(w=w, b=b, k=k, stride=2, pad=pad))
            in_ch = out_ch
        else:
            w, b = _conv_w(next(keys), conv_flts[idx], in_ch, 4)
            enc_w.append(dict(w=w, b=b, k=4, stride=2, pad=1))
            in_ch = conv_flts[idx]

    enc_dense = _linear_w(next(keys), top_final, latent_dim * 2)
    dec_dense = _linear_w(next(keys), latent_dim, top_final)

    dec_w, dec_left, dec_right = [], [], []
    in_ch = conv_flts[n_layers - 1]
    if fusion_level == n_layers:
        multi_path, in_ch = True, in_ch // 2
    else:
        multi_path = False
    for idx in range(n_layers - 1, -1, -1):
        if multi_path:
            if idx == 0:
                k, pad, zp, out_ch = 8, 3, 9, input_channels
            else:
                k, pad, zp, out_ch = 4, 1, 3, conv_flts[idx - 1] // 2
            w, b = _tconv_w(next(keys), in_ch, out_ch, k)
            dec_left.append(dict(w=w, b=b, k=k, stride=2, pad=pad, zero_pad=zp))
            w, b = _tconv_w(next(keys), in_ch, out_ch, k)
            dec_right.append(dict(w=w, b=b, k=k, stride=2, pad=pad, zero_pad=zp))
            in_ch = out_ch
        else:
            w, b = _tconv_w(next(keys), in_ch, conv_flts[idx - 1], 4)
            dec_w.append(dict(w=w, b=b, k=4, stride=2, pad=1, zero_pad=3))
            in_ch = conv_flts[idx - 1]
        if idx == fusion_level:
            multi_path, in_ch = True, in_ch // 2

    cfg = dict(input_channels=input_channels, input_dim=input_dim,
               latent_dim=latent_dim, conv_flts=list(conv_flts),
               fusion_level=fusion_level, n_layers=n_layers,
               top_flatten_dim=top_flatten_dim, top_final=top_final)
    raw = dict(enc_left=enc_left, enc_right=enc_right, enc_w=enc_w,
               enc_dense=enc_dense, dec_dense=dec_dense,
               dec_w=dec_w, dec_left=dec_left, dec_right=dec_right)
    return cfg, raw


def _pack_conv(w, b):
    """Conv2d weight (Cout,Cin,k,k) -> GEMM (k*k*Cin, Cout) matching im2col."""
    cout, cin, k, _ = w.shape
    wmat = jnp.transpose(w, (2, 3, 1, 0)).reshape(k * k * cin, cout)
    return wmat.astype(jnp.bfloat16), b.astype(jnp.float32)


def _pack_tconv(w, b):
    """ConvTranspose2d weight (Cin,Cout,k,k) -> phase-fused GEMM weight
    ((k/2)^2*Cin, 4*Cout): column block p = rh*2+rw is the spatially flipped
    (rh, rw) phase sub-kernel."""
    cin, cout, k, _ = w.shape
    k2 = k // 2
    cols = []
    for rh in range(2):
        for rw in range(2):
            ws = jnp.flip(w[:, :, rh::2, rw::2], axis=(-2, -1))
            cols.append(jnp.transpose(ws, (2, 3, 0, 1)).reshape(k2 * k2 * cin,
                                                                cout))
    wmat = jnp.concatenate(cols, axis=1)
    return wmat.astype(jnp.bfloat16), jnp.tile(b, 4).astype(jnp.float32)


def pack_params(cfg, raw):
    """One-time weight packing: `plan` = static geometry, `packed` = arrays."""
    plan = dict(enc_branch=[], enc_w=[], dec_w=[], dec_branch=[])
    packed = dict(enc_branch=[], enc_w=[], dec_w=[], dec_branch=[])

    for ll, lr in zip(raw["enc_left"], raw["enc_right"]):
        wl, bl = _pack_conv(ll["w"], ll["b"])
        wr, br = _pack_conv(lr["w"], lr["b"])
        packed["enc_branch"].append(dict(wmat=jnp.stack([wl, wr]),
                                         bias=jnp.stack([bl, br])))
        plan["enc_branch"].append(dict(k=ll["k"], stride=ll["stride"],
                                       pad=ll["pad"]))

    for lay in raw["enc_w"]:
        wm, bs = _pack_conv(lay["w"], lay["b"])
        packed["enc_w"].append(dict(wmat=wm[None], bias=bs[None]))
        plan["enc_w"].append(dict(k=lay["k"], stride=lay["stride"],
                                  pad=lay["pad"]))

    C = cfg["conv_flts"][-1]
    S = cfg["top_flatten_dim"]
    we, be = raw["enc_dense"]
    # torch flattens NCHW; activations here are NHWC -> permute input rows.
    we = we.reshape(C, S, S, -1).transpose(1, 2, 0, 3)
    we = we.reshape(cfg["top_final"], -1)
    packed["enc_dense"] = dict(wmat=we.astype(jnp.bfloat16)[None],
                               bias=be.astype(jnp.float32)[None])

    wd, bd = raw["dec_dense"]
    # torch reshapes the dense output to NCHW; we want NHWC -> permute columns.
    wd = wd.reshape(cfg["latent_dim"], C, S, S).transpose(0, 2, 3, 1)
    wd = wd.reshape(cfg["latent_dim"], cfg["top_final"])
    bd = bd.reshape(C, S, S).transpose(1, 2, 0).reshape(-1)
    packed["dec_dense"] = dict(wmat=wd.astype(jnp.bfloat16)[None],
                               bias=bd.astype(jnp.float32)[None])

    for lay in raw["dec_w"]:
        wm, bs = _pack_tconv(lay["w"], lay["b"])
        packed["dec_w"].append(dict(wmat=wm[None], bias=bs[None]))
        plan["dec_w"].append(dict(k=lay["k"], pad=lay["pad"],
                                  zero_pad=lay["zero_pad"]))

    for ll, lr in zip(raw["dec_left"], raw["dec_right"]):
        wl, bl = _pack_tconv(ll["w"], ll["b"])
        wr, br = _pack_tconv(lr["w"], lr["b"])
        packed["dec_branch"].append(dict(wmat=jnp.stack([wl, wr]),
                                         bias=jnp.stack([bl, br])))
        plan["dec_branch"].append(dict(k=ll["k"], pad=ll["pad"],
                                       zero_pad=ll["zero_pad"]))

    return plan, packed


# ---------------------------------------------------------------------------
# Forward pass (== SphericalGVAE.forward, training mode -> rsample with eps)
# ---------------------------------------------------------------------------
def spherical_gvae_forward(cfg, plan, packed, left_x, right_x, eps):
    B = left_x.shape[0]
    # NCHW -> NHWC once; left/right stacked on a leading branch axis (G=2).
    xs = jnp.stack([jnp.transpose(left_x, (0, 2, 3, 1)),
                    jnp.transpose(right_x, (0, 2, 3, 1))]).astype(jnp.bfloat16)

    # ---- encode ----
    nb = len(plan["enc_branch"])
    for i, (geo, par) in enumerate(zip(plan["enc_branch"],
                                       packed["enc_branch"])):
        # relu(cat(l, r)) == cat(relu(l), relu(r)) -> fuse ReLU into last conv.
        xs = spma_conv(xs, par["wmat"], par["bias"], k=geo["k"],
                       stride=geo["stride"], pad=geo["pad"],
                       relu=(i == nb - 1))
    x = jnp.concatenate([xs[0], xs[1]], axis=-1)[None]     # channel cat (NHWC)
    for geo, par in zip(plan["enc_w"], packed["enc_w"]):
        x = spma_conv(x, par["wmat"], par["bias"], k=geo["k"],
                      stride=geo["stride"], pad=geo["pad"], relu=True)
    x = x.reshape(1, B, cfg["top_final"])
    stats = fused_gemm(x, packed["enc_dense"]["wmat"],
                       packed["enc_dense"]["bias"],
                       relu=False, out_dtype=jnp.float32)[0]
    z_mu, z_logvar = jnp.split(stats, 2, axis=-1)

    # q = Normal(loc=z_mu, scale=exp(z_logvar)**0.5); z = q.rsample()
    # (tiny (B, latent) elementwise op -> plain jnp, XLA fuses it)
    q_scale = jnp.exp(0.5 * z_logvar)
    z = z_mu + eps * q_scale

    # ---- decode ----
    h = fused_gemm(z[None], packed["dec_dense"]["wmat"],
                   packed["dec_dense"]["bias"],
                   relu=True, out_dtype=jnp.bfloat16)
    h = h.reshape(1, B, cfg["top_flatten_dim"], cfg["top_flatten_dim"],
                  cfg["conv_flts"][-1])
    for geo, par in zip(plan["dec_w"], packed["dec_w"]):
        h = spma_conv_transpose(h, par["wmat"], par["bias"], k=geo["k"],
                                pad=geo["pad"], zero_pad=geo["zero_pad"],
                                relu=True)
    C = h.shape[-1]
    hs = jnp.stack([h[0, ..., :C // 2], h[0, ..., C // 2:]])  # chunk(dim=C)
    nd = len(plan["dec_branch"])
    for i, (geo, par) in enumerate(zip(plan["dec_branch"],
                                       packed["dec_branch"])):
        hs = spma_conv_transpose(
            hs, par["wmat"], par["bias"], k=geo["k"], pad=geo["pad"],
            zero_pad=geo["zero_pad"], relu=False,
            out_dtype=jnp.float32 if i == nd - 1 else jnp.bfloat16)
    l_rec = jnp.transpose(hs[0], (0, 3, 1, 2))
    r_rec = jnp.transpose(hs[1], (0, 3, 1, 2))
    return l_rec, r_rec, {"q_loc": z_mu, "q_scale": q_scale, "z": z}


# ---------------------------------------------------------------------------
# Pure-JAX (lax.conv) reference with matching bf16 cast points (self-check)
# ---------------------------------------------------------------------------
def _ref_conv(x, lay):
    p = lay["pad"]
    x = x.astype(jnp.bfloat16)
    if p:
        x = jnp.pad(x, ((0, 0), (0, 0), (p, p), (p, p)))
    y = lax.conv_general_dilated(
        x, lay["w"].astype(jnp.bfloat16), (lay["stride"],) * 2, "VALID",
        dimension_numbers=("NCHW", "OIHW", "NCHW"),
        preferred_element_type=jnp.float32)
    return y + lay["b"][None, :, None, None]


def _ref_tconv(x, lay):
    k, p, zp, s = lay["k"], lay["pad"], lay["zero_pad"], lay["stride"]
    x = x.astype(jnp.bfloat16)
    if p:
        x = jnp.pad(x, ((0, 0), (0, 0), (p, p), (p, p)))
    wf = jnp.flip(lay["w"], axis=(-2, -1)).transpose(1, 0, 2, 3)
    e = k - 1 - zp
    lo, crop = max(e, 0), max(-e, 0)
    y = lax.conv_general_dilated(
        x, wf.astype(jnp.bfloat16), (1, 1), [(lo, lo), (lo, lo)],
        lhs_dilation=(s, s), dimension_numbers=("NCHW", "OIHW", "NCHW"),
        preferred_element_type=jnp.float32)
    if crop:
        y = y[:, :, crop:-crop, crop:-crop]
    return y + lay["b"][None, :, None, None]


def reference_forward(cfg, raw, left_x, right_x, eps):
    l, r = left_x, right_x
    for lay in raw["enc_left"]:
        l = _ref_conv(l, lay)
    for lay in raw["enc_right"]:
        r = _ref_conv(r, lay)
    x = jax.nn.relu(jnp.concatenate([l, r], axis=1))
    for lay in raw["enc_w"]:
        x = jax.nn.relu(_ref_conv(x, lay))
    x = x.reshape(-1, cfg["top_final"])
    we, be = raw["enc_dense"]
    stats = jnp.dot(x.astype(jnp.bfloat16), we.astype(jnp.bfloat16),
                    preferred_element_type=jnp.float32) + be
    mu, logvar = jnp.split(stats, 2, axis=-1)
    scale = jnp.exp(0.5 * logvar)
    z = mu + eps * scale
    wd, bd = raw["dec_dense"]
    h = jax.nn.relu(jnp.dot(z.astype(jnp.bfloat16), wd.astype(jnp.bfloat16),
                            preferred_element_type=jnp.float32) + bd)
    h = h.reshape(-1, cfg["conv_flts"][-1], cfg["top_flatten_dim"],
                  cfg["top_flatten_dim"])
    for lay in raw["dec_w"]:
        h = jax.nn.relu(_ref_tconv(h, lay))
    lr_, rr_ = jnp.split(h, 2, axis=1)
    for lay in raw["dec_left"]:
        lr_ = _ref_tconv(lr_, lay)
    for lay in raw["dec_right"]:
        rr_ = _ref_tconv(rr_, lay)
    return lr_, rr_, mu, scale, z


# ---------------------------------------------------------------------------
if __name__ == "__main__":
    key = jax.random.PRNGKey(0)
    k_param, k_left, k_right, k_eps, k_x, k_w, k_b = jax.random.split(key, 7)

    # Small config consistent with the module: 2 layers halving 16 -> 8 -> 4.
    B, C, D = 2, 2, 16
    latent_dim = 8
    conv_flts = [8, 16]
    fusion_level = 1

    cfg, raw = init_spherical_gvae(
        k_param, input_channels=C, input_dim=D, latent_dim=latent_dim,
        conv_flts=conv_flts, fusion_level=fusion_level)
    plan, packed = pack_params(cfg, raw)

    left_x = jax.random.normal(k_left, (B, C, D, D), jnp.float32)
    right_x = jax.random.normal(k_right, (B, C, D, D), jnp.float32)
    eps = jax.random.normal(k_eps, (B, latent_dim), jnp.float32)

    fwd = jax.jit(lambda p, lx, rx, e: spherical_gvae_forward(
        cfg, plan, p, lx, rx, e))
    l_rec, r_rec, extra = fwd(packed, left_x, right_x, eps)
    jax.block_until_ready((l_rec, r_rec, extra))

    # Shape / sanity checks.
    assert l_rec.shape == (B, C, D, D), l_rec.shape
    assert r_rec.shape == (B, C, D, D), r_rec.shape
    assert extra["z"].shape == (B, latent_dim)
    assert extra["q_loc"].shape == (B, latent_dim)
    assert extra["q_scale"].shape == (B, latent_dim)
    assert bool(jnp.all(jnp.isfinite(l_rec)))
    assert bool(jnp.all(jnp.isfinite(r_rec)))

    def relerr(a, b):
        return float(jnp.max(jnp.abs(a - b)) / (jnp.max(jnp.abs(b)) + 1e-6))

    # Numerical self-check vs a pure-JAX lax.conv reference (same bf16 casts).
    l_ref, r_ref, mu_ref, scale_ref, z_ref = reference_forward(
        cfg, raw, left_x, right_x, eps)
    assert relerr(extra["q_loc"], mu_ref) < 3e-2, relerr(extra["q_loc"], mu_ref)
    assert relerr(extra["z"], z_ref) < 3e-2, relerr(extra["z"], z_ref)
    assert relerr(l_rec, l_ref) < 3e-2, relerr(l_rec, l_ref)
    assert relerr(r_rec, r_ref) < 3e-2, relerr(r_rec, r_ref)

    # Exercise the K-tiled (kt > 1) accumulation path of fused_gemm, which the
    # tiny model config above never reaches (all its K values fit one tile).
    xt = jax.random.normal(k_x, (2, 256, 4096), jnp.float32)
    wt = (0.02 * jax.random.normal(k_w, (2, 4096, 128),
                                   jnp.float32)).astype(jnp.bfloat16)
    bt = jax.random.normal(k_b, (2, 128), jnp.float32)
    yt = fused_gemm(xt, wt, bt, relu=True, out_dtype=jnp.float32)
    jax.block_until_ready(yt)
    yref = jnp.maximum(
        jnp.einsum("gmk,gkn->gmn", xt.astype(jnp.bfloat16), wt,
                   preferred_element_type=jnp.float32) + bt[:, None, :], 0.0)
    assert relerr(yt, yref) < 2e-2, relerr(yt, yref)

    print("KERNEL_OK")
</pallas_src>

<mosaic_0001>
module attributes {stable_mosaic.version = 11 : i64} {
  func.func @_gemm_bias_kernel(%arg0: i32, %arg1: i32, %arg2: i32, %arg3: memref<1x128x128xbf16, #tpu.memory_space<vmem>>, %arg4: memref<1x128x128xbf16, #tpu.memory_space<vmem>>, %arg5: memref<1x1x128xf32, #tpu.memory_space<vmem>>, %arg6: memref<1x128x128xbf16, #tpu.memory_space<vmem>>) attributes {dimension_semantics = [#tpu.dimension_semantics<parallel>, #tpu.dimension_semantics<parallel>, #tpu.dimension_semantics<parallel>], iteration_bounds = array<i64: 2, 1, 1>, scalar_prefetch = 0 : i64, scratch_operands = 0 : i64, tpu.core_type = #tpu.core_type<tc>, window_params = [{transform_indices = @transform_0, window_bounds = array<i64: 1, 128, 128>}, {transform_indices = @transform_1, window_bounds = array<i64: 1, 128, 128>}, {transform_indices = @transform_2, window_bounds = array<i64: 1, 1, 128>}, {transform_indices = @transform_3, window_bounds = array<i64: 1, 128, 128>}]} {
    %c0 = arith.constant 0 : index
    %c0_0 = arith.constant 0 : index
    %c0_1 = arith.constant 0 : index
    %0 = vector.load %arg3[%c0, %c0_0, %c0_1] : memref<1x128x128xbf16, #tpu.memory_space<vmem>>, vector<1x128x128xbf16>
    %1 = vector.shape_cast %0 : vector<1x128x128xbf16> to vector<128x128xbf16>
    %c0_2 = arith.constant 0 : index
    %c0_3 = arith.constant 0 : index
    %c0_4 = arith.constant 0 : index
    %2 = vector.load %arg4[%c0_2, %c0_3, %c0_4] : memref<1x128x128xbf16, #tpu.memory_space<vmem>>, vector<1x128x128xbf16>
    %3 = vector.shape_cast %2 : vector<1x128x128xbf16> to vector<128x128xbf16>
    %cst = arith.constant dense<0.000000e+00> : vector<128x128xf32>
    %4 = tpu.matmul %1, %3, %cst {dimension_numbers = #tpu.dot_dimension_numbers<[1], [0], [0], [1], [0, 0, 1, 1], [], []>} : vector<128x128xbf16>, vector<128x128xbf16>, vector<128x128xf32> -> vector<128x128xf32>
    %c0_5 = arith.constant 0 : index
    %c0_6 = arith.constant 0 : index
    %c0_7 = arith.constant 0 : index
    %5 = vector.load %arg5[%c0_5, %c0_6, %c0_7] : memref<1x1x128xf32, #tpu.memory_space<vmem>>, vector<1x1x128xf32>
    %6 = vector.shape_cast %5 : vector<1x1x128xf32> to vector<1x128xf32>
    %7 = vector.broadcast %6 : vector<1x128xf32> to vector<128x128xf32>
    %8 = arith.addf %4, %7 : vector<128x128xf32>
    %cst_8 = arith.constant 0.000000e+00 : f32
    %9 = vector.broadcast %cst_8 : f32 to vector<128x128xf32>
    %10 = arith.maximumf %8, %9 : vector<128x128xf32>
    %11 = arith.truncf %10 : vector<128x128xf32> to vector<128x128xbf16>
    %c0_9 = arith.constant 0 : index
    %c0_10 = arith.constant 0 : index
    %c0_11 = arith.constant 0 : index
    %12 = vector.load %arg6[%c0_9, %c0_10, %c0_11] : memref<1x128x128xbf16, #tpu.memory_space<vmem>>, vector<1x128x128xbf16>
    %13 = vector.shape_cast %12 : vector<1x128x128xbf16> to vector<128x128xbf16>
    %14 = vector.shape_cast %11 : vector<128x128xbf16> to vector<1x128x128xbf16>
    tpu.vector_store %arg6[%c0_9, %c0_10, %c0_11], %14 {strides = array<i32>} : memref<1x128x128xbf16, #tpu.memory_space<vmem>>, vector<1x128x128xbf16>,
    return
  }
  func.func @transform_0(%arg0: i32, %arg1: i32, %arg2: i32) -> (i32, i32, i32) {
    %c0_i32 = arith.constant 0 : i32
    %c0_i32_0 = arith.constant 0 : i32
    return %arg0, %arg1, %c0_i32 : i32, i32, i32
  }
  func.func @transform_1(%arg0: i32, %arg1: i32, %arg2: i32) -> (i32, i32, i32) {
    %c0_i32 = arith.constant 0 : i32
    %c0_i32_0 = arith.constant 0 : i32
    return %arg0, %c0_i32, %arg2 : i32, i32, i32
  }
  func.func @transform_2(%arg0: i32, %arg1: i32, %arg2: i32) -> (i32, i32, i32) {
    %c0_i32 = arith.constant 0 : i32
    %c0_i32_0 = arith.constant 0 : i32
    return %arg0, %c0_i32, %arg2 : i32, i32, i32
  }
  func.func @transform_3(%arg0: i32, %arg1: i32, %arg2: i32) -> (i32, i32, i32) {
    %c0_i32 = arith.constant 0 : i32
    return %arg0, %arg1, %arg2 : i32, i32, i32
  }
}

module attributes {stable_mosaic.version = 11 : i64} {
  func.func @_gemm_bias_kernel(%arg0: i32, %arg1: i32, %arg2: i32, %arg3: memref<1x16x128xbf16, #tpu.memory_space<vmem>>, %arg4: memref<1x128x128xbf16, #tpu.memory_space<vmem>>, %arg5: memref<1x1x128xf32, #tpu.memory_space<vmem>>, %arg6: memref<1x16x128xbf16, #tpu.memory_space<vmem>>) attributes {dimension_semantics = [#tpu.dimension_semantics<parallel>, #tpu.dimension_semantics<parallel>, #tpu.dimension_semantics<parallel>], iteration_bounds = array<i64: 1, 2, 1>, scalar_prefetch = 0 : i64, scratch_operands = 0 : i64, tpu.core_type = #tpu.core_type<tc>, window_params = [{transform_indices = @transform_0, window_bounds = array<i64: 1, 16, 128>}, {transform_indices = @transform_1, window_bounds = array<i64: 1, 128, 128>}, {transform_indices = @transform_2, window_bounds = array<i64: 1, 1, 128>}, {transform_indices = @transform_3, window_bounds = array<i64: 1, 16, 128>}]} {
    %c0 = arith.constant 0 : index
    %c0_0 = arith.constant 0 : index
    %c0_1 = arith.constant 0 : index
    %0 = vector.load %arg3[%c0, %c0_0, %c0_1] : memref<1x16x128xbf16, #tpu.memory_space<vmem>>, vector<1x16x128xbf16>
    %1 = vector.shape_cast %0 : vector<1x16x128xbf16> to vector<16x128xbf16>
    %c0_2 = arith.constant 0 : index
    %c0_3 = arith.constant 0 : index
    %c0_4 = arith.constant 0 : index
    %2 = vector.load %arg4[%c0_2, %c0_3, %c0_4] : memref<1x128x128xbf16, #tpu.memory_space<vmem>>, vector<1x128x128xbf16>
    %3 = vector.shape_cast %2 : vector<1x128x128xbf16> to vector<128x128xbf16>
    %cst = arith.constant dense<0.000000e+00> : vector<16x128xf32>
    %4 = tpu.matmul %1, %3, %cst {dimension_numbers = #tpu.dot_dimension_numbers<[1], [0], [0], [1], [0, 0, 1, 1], [], []>} : vector<16x128xbf16>, vector<128x128xbf16>, vector<16x128xf32> -> vector<16x128xf32>
    %c0_5 = arith.constant 0 : index
    %c0_6 = arith.constant 0 : index
    %c0_7 = arith.constant 0 : index
    %5 = vector.load %arg5[%c0_5, %c0_6, %c0_7] : memref<1x1x128xf32, #tpu.memory_space<vmem>>, vector<1x1x128xf32>
    %6 = vector.shape_cast %5 : vector<1x1x128xf32> to vector<1x128xf32>
    %7 = vector.broadcast %6 : vector<1x128xf32> to vector<16x128xf32>
    %8 = arith.addf %4, %7 : vector<16x128xf32>
    %cst_8 = arith.constant 0.000000e+00 : f32
    %9 = vector.broadcast %cst_8 : f32 to vector<16x128xf32>
    %10 = arith.maximumf %8, %9 : vector<16x128xf32>
    %11 = arith.truncf %10 : vector<16x128xf32> to vector<16x128xbf16>
    %c0_9 = arith.constant 0 : index
    %c0_10 = arith.constant 0 : index
    %c0_11 = arith.constant 0 : index
    %12 = vector.load %arg6[%c0_9, %c0_10, %c0_11] : memref<1x16x128xbf16, #tpu.memory_space<vmem>>, vector<1x16x128xbf16>
    %13 = vector.shape_cast %12 : vector<1x16x128xbf16> to vector<16x128xbf16>
    %14 = vector.shape_cast %11 : vector<16x128xbf16> to vector<1x16x128xbf16>
    tpu.vector_store %arg6[%c0_9, %c0_10, %c0_11], %14 {strides = array<i32>} : memref<1x16x128xbf16, #tpu.memory_space<vmem>>, vector<1x16x128xbf16>,
    return
  }
  func.func @transform_0(%arg0: i32, %arg1: i32, %arg2: i32) -> (i32, i32, i32) {
    %c0_i32 = arith.constant 0 : i32
    %c0_i32_0 = arith.constant 0 : i32
    return %arg0, %arg1, %c0_i32 : i32, i32, i32
  }
  func.func @transform_1(%arg0: i32, %arg1: i32, %arg2: i32) -> (i32, i32, i32) {
    %c0_i32 = arith.constant 0 : i32
    %c0_i32_0 = arith.constant 0 : i32
    return %arg0, %c0_i32, %arg2 : i32, i32, i32
  }
  func.func @transform_2(%arg0: i32, %arg1: i32, %arg2: i32) -> (i32, i32, i32) {
    %c0_i32 = arith.constant 0 : i32
    %c0_i32_0 = arith.constant 0 : i32
    return %arg0, %c0_i32, %arg2 : i32, i32, i32
  }
  func.func @transform_3(%arg0: i32, %arg1: i32, %arg2: i32) -> (i32, i32, i32) {
    %c0_i32 = arith.constant 0 : i32
    return %arg0, %arg1, %arg2 : i32, i32, i32
  }
}

module attributes {stable_mosaic.version = 11 : i64} {
  func.func @_gemm_bias_kernel(%arg0: i32, %arg1: i32, %arg2: i32, %arg3: memref<1x8x256xbf16, #tpu.memory_space<vmem>>, %arg4: memref<1x256x128xbf16, #tpu.memory_space<vmem>>, %arg5: memref<1x1x128xf32, #tpu.memory_space<vmem>>, %arg6: memref<1x8x128xf32, #tpu.memory_space<vmem>>) attributes {dimension_semantics = [#tpu.dimension_semantics<parallel>, #tpu.dimension_semantics<parallel>, #tpu.dimension_semantics<parallel>], iteration_bounds = array<i64: 1, 1, 1>, scalar_prefetch = 0 : i64, scratch_operands = 0 : i64, tpu.core_type = #tpu.core_type<tc>, window_params = [{transform_indices = @transform_0, window_bounds = array<i64: 1, 8, 256>}, {transform_indices = @transform_1, window_bounds = array<i64: 1, 256, 128>}, {transform_indices = @transform_2, window_bounds = array<i64: 1, 1, 128>}, {transform_indices = @transform_3, window_bounds = array<i64: 1, 8, 128>}]} {
    %c0 = arith.constant 0 : index
    %c0_0 = arith.constant 0 : index
    %c0_1 = arith.constant 0 : index
    %0 = vector.load %arg3[%c0, %c0_0, %c0_1] : memref<1x8x256xbf16, #tpu.memory_space<vmem>>, vector<1x8x256xbf16>
    %1 = vector.shape_cast %0 : vector<1x8x256xbf16> to vector<8x256xbf16>
    %c0_2 = arith.constant 0 : index
    %c0_3 = arith.constant 0 : index
    %c0_4 = arith.constant 0 : index
    %2 = vector.load %arg4[%c0_2, %c0_3, %c0_4] : memref<1x256x128xbf16, #tpu.memory_space<vmem>>, vector<1x256x128xbf16>
    %3 = vector.shape_cast %2 : vector<1x256x128xbf16> to vector<256x128xbf16>
    %cst = arith.constant dense<0.000000e+00> : vector<8x128xf32>
    %4 = tpu.matmul %1, %3, %cst {dimension_numbers = #tpu.dot_dimension_numbers<[1], [0], [0], [1], [0, 0, 1, 1], [], []>} : vector<8x256xbf16>, vector<256x128xbf16>, vector<8x128xf32> -> vector<8x128xf32>
    %c0_5 = arith.constant 0 : index
    %c0_6 = arith.constant 0 : index
    %c0_7 = arith.constant 0 : index
    %5 = vector.load %arg5[%c0_5, %c0_6, %c0_7] : memref<1x1x128xf32, #tpu.memory_space<vmem>>, vector<1x1x128xf32>
    %6 = vector.shape_cast %5 : vector<1x1x128xf32> to vector<1x128xf32>
    %7 = vector.broadcast %6 : vector<1x128xf32> to vector<8x128xf32>
    %8 = arith.addf %4, %7 : vector<8x128xf32>
    %c0_8 = arith.constant 0 : index
    %c0_9 = arith.constant 0 : index
    %c0_10 = arith.constant 0 : index
    %9 = vector.load %arg6[%c0_8, %c0_9, %c0_10] : memref<1x8x128xf32, #tpu.memory_space<vmem>>, vector<1x8x128xf32>
    %10 = vector.shape_cast %9 : vector<1x8x128xf32> to vector<8x128xf32>
    %11 = vector.shape_cast %8 : vector<8x128xf32> to vector<1x8x128xf32>
    tpu.vector_store %arg6[%c0_8, %c0_9, %c0_10], %11 {strides = array<i32>} : memref<1x8x128xf32, #tpu.memory_space<vmem>>, vector<1x8x128xf32>,
    return
  }
  func.func @transform_0(%arg0: i32, %arg1: i32, %arg2: i32) -> (i32, i32, i32) {
    %c0_i32 = arith.constant 0 : i32
    %c0_i32_0 = arith.constant 0 : i32
    return %arg0, %arg1, %c0_i32 : i32, i32, i32
  }
  func.func @transform_1(%arg0: i32, %arg1: i32, %arg2: i32) -> (i32, i32, i32) {
    %c0_i32 = arith.constant 0 : i32
    %c0_i32_0 = arith.constant 0 : i32
    return %arg0, %c0_i32, %arg2 : i32, i32, i32
  }
  func.func @transform_2(%arg0: i32, %arg1: i32, %arg2: i32) -> (i32, i32, i32) {
    %c0_i32 = arith.constant 0 : i32
    %c0_i32_0 = arith.constant 0 : i32
    return %arg0, %c0_i32, %arg2 : i32, i32, i32
  }
  func.func @transform_3(%arg0: i32, %arg1: i32, %arg2: i32) -> (i32, i32, i32) {
    %c0_i32 = arith.constant 0 : i32
    return %arg0, %arg1, %arg2 : i32, i32, i32
  }
}

module attributes {stable_mosaic.version = 11 : i64} {
  func.func @_gemm_bias_kernel(%arg0: i32, %arg1: i32, %arg2: i32, %arg3: memref<1x8x8xbf16, #tpu.memory_space<vmem>>, %arg4: memref<1x8x256xbf16, #tpu.memory_space<vmem>>, %arg5: memref<1x1x256xf32, #tpu.memory_space<vmem>>, %arg6: memref<1x8x256xbf16, #tpu.memory_space<vmem>>) attributes {dimension_semantics = [#tpu.dimension_semantics<parallel>, #tpu.dimension_semantics<parallel>, #tpu.dimension_semantics<parallel>], iteration_bounds = array<i64: 1, 1, 1>, scalar_prefetch = 0 : i64, scratch_operands = 0 : i64, tpu.core_type = #tpu.core_type<tc>, window_params = [{transform_indices = @transform_0, window_bounds = array<i64: 1, 8, 8>}, {transform_indices = @transform_1, window_bounds = array<i64: 1, 8, 256>}, {transform_indices = @transform_2, window_bounds = array<i64: 1, 1, 256>}, {transform_indices = @transform_3, window_bounds = array<i64: 1, 8, 256>}]} {
    %c0 = arith.constant 0 : index
    %c0_0 = arith.constant 0 : index
    %c0_1 = arith.constant 0 : index
    %0 = vector.load %arg3[%c0, %c0_0, %c0_1] : memref<1x8x8xbf16, #tpu.memory_space<vmem>>, vector<1x8x8xbf16>
    %1 = vector.shape_cast %0 : vector<1x8x8xbf16> to vector<8x8xbf16>
    %c0_2 = arith.constant 0 : index
    %c0_3 = arith.constant 0 : index
    %c0_4 = arith.constant 0 : index
    %2 = vector.load %arg4[%c0_2, %c0_3, %c0_4] : memref<1x8x256xbf16, #tpu.memory_space<vmem>>, vector<1x8x256xbf16>
    %3 = vector.shape_cast %2 : vector<1x8x256xbf16> to vector<8x256xbf16>
    %cst = arith.constant dense<0.000000e+00> : vector<8x256xf32>
    %4 = tpu.matmul %1, %3, %cst {dimension_numbers = #tpu.dot_dimension_numbers<[1], [0], [0], [1], [0, 0, 1, 1], [], []>} : vector<8x8xbf16>, vector<8x256xbf16>, vector<8x256xf32> -> vector<8x256xf32>
    %c0_5 = arith.constant 0 : index
    %c0_6 = arith.constant 0 : index
    %c0_7 = arith.constant 0 : index
    %5 = vector.load %arg5[%c0_5, %c0_6, %c0_7] : memref<1x1x256xf32, #tpu.memory_space<vmem>>, vector<1x1x256xf32>
    %6 = vector.shape_cast %5 : vector<1x1x256xf32> to vector<1x256xf32>
    %7 = vector.broadcast %6 : vector<1x256xf32> to vector<8x256xf32>
    %8 = arith.addf %4, %7 : vector<8x256xf32>
    %cst_8 = arith.constant 0.000000e+00 : f32
    %9 = vector.broadcast %cst_8 : f32 to vector<8x256xf32>
    %10 = arith.maximumf %8, %9 : vector<8x256xf32>
    %11 = arith.truncf %10 : vector<8x256xf32> to vector<8x256xbf16>
    %c0_9 = arith.constant 0 : index
    %c0_10 = arith.constant 0 : index
    %c0_11 = arith.constant 0 : index
    %12 = vector.load %arg6[%c0_9, %c0_10, %c0_11] : memref<1x8x256xbf16, #tpu.memory_space<vmem>>, vector<1x8x256xbf16>
    %13 = vector.shape_cast %12 : vector<1x8x256xbf16> to vector<8x256xbf16>
    %14 = vector.shape_cast %11 : vector<8x256xbf16> to vector<1x8x256xbf16>
    tpu.vector_store %arg6[%c0_9, %c0_10, %c0_11], %14 {strides = array<i32>} : memref<1x8x256xbf16, #tpu.memory_space<vmem>>, vector<1x8x256xbf16>,
    return
  }
  func.func @transform_0(%arg0: i32, %arg1: i32, %arg2: i32) -> (i32, i32, i32) {
    %c0_i32 = arith.constant 0 : i32
    %c0_i32_0 = arith.constant 0 : i32
    return %arg0, %arg1, %c0_i32 : i32, i32, i32
  }
  func.func @transform_1(%arg0: i32, %arg1: i32, %arg2: i32) -> (i32, i32, i32) {
    %c0_i32 = arith.constant 0 : i32
    %c0_i32_0 = arith.constant 0 : i32
    return %arg0, %c0_i32, %arg2 : i32, i32, i32
  }
  func.func @transform_2(%arg0: i32, %arg1: i32, %arg2: i32) -> (i32, i32, i32) {
    %c0_i32 = arith.constant 0 : i32
    %c0_i32_0 = arith.constant 0 : i32
    return %arg0, %c0_i32, %arg2 : i32, i32, i32
  }
  func.func @transform_3(%arg0: i32, %arg1: i32, %arg2: i32) -> (i32, i32, i32) {
    %c0_i32 = arith.constant 0 : i32
    return %arg0, %arg1, %arg2 : i32, i32, i32
  }
}

module attributes {stable_mosaic.version = 11 : i64} {
  func.func @_gemm_bias_kernel(%arg0: i32, %arg1: i32, %arg2: i32, %arg3: memref<1x56x64xbf16, #tpu.memory_space<vmem>>, %arg4: memref<1x64x128xbf16, #tpu.memory_space<vmem>>, %arg5: memref<1x1x128xf32, #tpu.memory_space<vmem>>, %arg6: memref<1x56x128xbf16, #tpu.memory_space<vmem>>) attributes {dimension_semantics = [#tpu.dimension_semantics<parallel>, #tpu.dimension_semantics<parallel>, #tpu.dimension_semantics<parallel>], iteration_bounds = array<i64: 1, 2, 1>, scalar_prefetch = 0 : i64, scratch_operands = 0 : i64, tpu.core_type = #tpu.core_type<tc>, window_params = [{transform_indices = @transform_0, window_bounds = array<i64: 1, 56, 64>}, {transform_indices = @transform_1, window_bounds = array<i64: 1, 64, 128>}, {transform_indices = @transform_2, window_bounds = array<i64: 1, 1, 128>}, {transform_indices = @transform_3, window_bounds = array<i64: 1, 56, 128>}]} {
    %c0 = arith.constant 0 : index
    %c0_0 = arith.constant 0 : index
    %c0_1 = arith.constant 0 : index
    %0 = vector.load %arg3[%c0, %c0_0, %c0_1] : memref<1x56x64xbf16, #tpu.memory_space<vmem>>, vector<1x56x64xbf16>
    %1 = vector.shape_cast %0 : vector<1x56x64xbf16> to vector<56x64xbf16>
    %c0_2 = arith.constant 0 : index
    %c0_3 = arith.constant 0 : index
    %c0_4 = arith.constant 0 : index
    %2 = vector.load %arg4[%c0_2, %c0_3, %c0_4] : memref<1x64x128xbf16, #tpu.memory_space<vmem>>, vector<1x64x128xbf16>
    %3 = vector.shape_cast %2 : vector<1x64x128xbf16> to vector<64x128xbf16>
    %cst = arith.constant dense<0.000000e+00> : vector<56x128xf32>
    %4 = tpu.matmul %1, %3, %cst {dimension_numbers = #tpu.dot_dimension_numbers<[1], [0], [0], [1], [0, 0, 1, 1], [], []>} : vector<56x64xbf16>, vector<64x128xbf16>, vector<56x128xf32> -> vector<56x128xf32>
    %c0_5 = arith.constant 0 : index
    %c0_6 = arith.constant 0 : index
    %c0_7 = arith.constant 0 : index
    %5 = vector.load %arg5[%c0_5, %c0_6, %c0_7] : memref<1x1x128xf32, #tpu.memory_space<vmem>>, vector<1x1x128xf32>
    %6 = vector.shape_cast %5 : vector<1x1x128xf32> to vector<1x128xf32>
    %7 = vector.broadcast %6 : vector<1x128xf32> to vector<56x128xf32>
    %8 = arith.addf %4, %7 : vector<56x128xf32>
    %cst_8 = arith.constant 0.000000e+00 : f32
    %9 = vector.broadcast %cst_8 : f32 to vector<56x128xf32>
    %10 = arith.maximumf %8, %9 : vector<56x128xf32>
    %11 = arith.truncf %10 : vector<56x128xf32> to vector<56x128xbf16>
    %c0_9 = arith.constant 0 : index
    %c0_10 = arith.constant 0 : index
    %c0_11 = arith.constant 0 : index
    %12 = vector.load %arg6[%c0_9, %c0_10, %c0_11] : memref<1x56x128xbf16, #tpu.memory_space<vmem>>, vector<1x56x128xbf16>
    %13 = vector.shape_cast %12 : vector<1x56x128xbf16> to vector<56x128xbf16>
    %14 = vector.shape_cast %11 : vector<56x128xbf16> to vector<1x56x128xbf16>
    tpu.vector_store %arg6[%c0_9, %c0_10, %c0_11], %14 {strides = array<i32>} : memref<1x56x128xbf16, #tpu.memory_space<vmem>>, vector<1x56x128xbf16>,
    return
  }
  func.func @transform_0(%arg0: i32, %arg1: i32, %arg2: i32) -> (i32, i32, i32) {
    %c0_i32 = arith.constant 0 : i32
    %c0_i32_0 = arith.constant 0 : i32
    return %arg0, %arg1, %c0_i32 : i32, i32, i32
  }
  func.func @transform_1(%arg0: i32, %arg1: i32, %arg2: i32) -> (i32, i32, i32) {
    %c0_i32 = arith.constant 0 : i32
    %c0_i32_0 = arith.constant 0 : i32
    return %arg0, %c0_i32, %arg2 : i32, i32, i32
  }
  func.func @transform_2(%arg0: i32, %arg1: i32, %arg2: i32) -> (i32, i32, i32) {
    %c0_i32 = arith.constant 0 : i32
    %c0_i32_0 = arith.constant 0 : i32
    return %arg0, %c0_i32, %arg2 : i32, i32, i32
  }
  func.func @transform_3(%arg0: i32, %arg1: i32, %arg2: i32) -> (i32, i32, i32) {
    %c0_i32 = arith.constant 0 : i32
    return %arg0, %arg1, %arg2 : i32, i32, i32
  }
}

module attributes {stable_mosaic.version = 11 : i64} {
  func.func @_gemm_bias_kernel(%arg0: i32, %arg1: i32, %arg2: i32, %arg3: memref<1x584x64xbf16, #tpu.memory_space<vmem>>, %arg4: memref<1x64x128xbf16, #tpu.memory_space<vmem>>, %arg5: memref<1x1x128xf32, #tpu.memory_space<vmem>>, %arg6: memref<1x584x128xf32, #tpu.memory_space<vmem>>) attributes {dimension_semantics = [#tpu.dimension_semantics<parallel>, #tpu.dimension_semantics<parallel>, #tpu.dimension_semantics<parallel>], iteration_bounds = array<i64: 2, 1, 1>, scalar_prefetch = 0 : i64, scratch_operands = 0 : i64, tpu.core_type = #tpu.core_type<tc>, window_params = [{transform_indices = @transform_0, window_bounds = array<i64: 1, 584, 64>}, {transform_indices = @transform_1, window_bounds = array<i64: 1, 64, 128>}, {transform_indices = @transform_2, window_bounds = array<i64: 1, 1, 128>}, {transform_indices = @transform_3, window_bounds = array<i64: 1, 584, 128>}]} {
    %c0 = arith.constant 0 : index
    %c0_0 = arith.constant 0 : index
    %c0_1 = arith.constant 0 : index
    %0 = vector.load %arg3[%c0, %c0_0, %c0_1] : memref<1x584x64xbf16, #tpu.memory_space<vmem>>, vector<1x584x64xbf16>
    %1 = vector.shape_cast %0 : vector<1x584x64xbf16> to vector<584x64xbf16>
    %c0_2 = arith.constant 0 : index
    %c0_3 = arith.constant 0 : index
    %c0_4 = arith.constant 0 : index
    %2 = vector.load %arg4[%c0_2, %c0_3, %c0_4] : memref<1x64x128xbf16, #tpu.memory_space<vmem>>, vector<1x64x128xbf16>
    %3 = vector.shape_cast %2 : vector<1x64x128xbf16> to vector<64x128xbf16>
    %cst = arith.constant dense<0.000000e+00> : vector<584x128xf32>
    %4 = tpu.matmul %1, %3, %cst {dimension_numbers = #tpu.dot_dimension_numbers<[1], [0], [0], [1], [0, 0, 1, 1], [], []>} : vector<584x64xbf16>, vector<64x128xbf16>, vector<584x128xf32> -> vector<584x128xf32>
    %c0_5 = arith.constant 0 : index
    %c0_6 = arith.constant 0 : index
    %c0_7 = arith.constant 0 : index
    %5 = vector.load %arg5[%c0_5, %c0_6, %c0_7] : memref<1x1x128xf32, #tpu.memory_space<vmem>>, vector<1x1x128xf32>
    %6 = vector.shape_cast %5 : vector<1x1x128xf32> to vector<1x128xf32>
    %7 = vector.broadcast %6 : vector<1x128xf32> to vector<584x128xf32>
    %8 = arith.addf %4, %7 : vector<584x128xf32>
    %c0_8 = arith.constant 0 : index
    %c0_9 = arith.constant 0 : index
    %c0_10 = arith.constant 0 : index
    %9 = vector.load %arg6[%c0_8, %c0_9, %c0_10] : memref<1x584x128xf32, #tpu.memory_space<vmem>>, vector<1x584x128xf32>
    %10 = vector.shape_cast %9 : vector<1x584x128xf32> to vector<584x128xf32>
    %11 = vector.shape_cast %8 : vector<584x128xf32> to vector<1x584x128xf32>
    tpu.vector_store %arg6[%c0_8, %c0_9, %c0_10], %11 {strides = array<i32>} : memref<1x584x128xf32, #tpu.memory_space<vmem>>, vector<1x584x128xf32>,
    return
  }
  func.func @transform_0(%arg0: i32, %arg1: i32, %arg2: i32) -> (i32, i32, i32) {
    %c0_i32 = arith.constant 0 : i32
    %c0_i32_0 = arith.constant 0 : i32
    return %arg0, %arg1, %c0_i32 : i32, i32, i32
  }
  func.func @transform_1(%arg0: i32, %arg1: i32, %arg2: i32) -> (i32, i32, i32) {
    %c0_i32 = arith.constant 0 : i32
    %c0_i32_0 = arith.constant 0 : i32
    return %arg0, %c0_i32, %arg2 : i32, i32, i32
  }
  func.func @transform_2(%arg0: i32, %arg1: i32, %arg2: i32) -> (i32, i32, i32) {
    %c0_i32 = arith.constant 0 : i32
    %c0_i32_0 = arith.constant 0 : i32
    return %arg0, %c0_i32, %arg2 : i32, i32, i32
  }
  func.func @transform_3(%arg0: i32, %arg1: i32, %arg2: i32) -> (i32, i32, i32) {
    %c0_i32 = arith.constant 0 : i32
    return %arg0, %arg1, %arg2 : i32, i32, i32
  }
}

</mosaic_0001>

<bundles_post_ra>
// kernel: _lambda_.6
= control target key start
LH: loop header
LB: loop body
LE: loop exit
PB: predicated region body
PF: predicated region fallthrough
CT: control target
= control target key end

     0   :  { %s1000_s12 = smov 0   ;;  %s1002_s13 = smov 0   ;;  %s1078_s0 = inlined_call_operand.vmem [shape: bf16[2,128,128], index: 0, kind: input, shape index: {}]   ;;  %s1079_s1 = inlined_call_operand.vmem [shape: bf16[2,128,128], index: 1, kind: input, shape index: {}]   ;;  %s1080_s2 = inlined_call_operand.vmem [shape: f32[2,1,128], index: 2, kind: input, shape index: {}]   ;;  %s1081_s3 = inlined_call_operand.vmem [shape: bf16[2,128,128], index: 3, kind: output, shape index: {}]  }
   0x1   :  { %s1004_s14 = smov 0  }
   0x2 LB: > { %s32_s15 = sadd.s32 1, %s974_s13  ;;  %p744_p0 = scmp.ge.s32.totalorder %s978_s14, 1  ;;  %s978_s14 = sphi %s1004_s14, %s13_s14   ;;  %s974_s13 = sphi %s1002_s13, %s1083_s13   ;;  %s970_s12 = sphi %s1000_s12, %s1082_s12  }
   0x3   : > { %p34_p1 = scmp.ge.s32.totalorder %s32_s15, 2  ;;  %p195_p2 = scmp.lt.s32.totalorder %s978_s14, 3 }
   0x5   : > { %s1085_s15 = smov (%p34_p1, %s32_s15), 0  ;;  %p196_p3 = pnand %p744_p0, %p195_p2 }
   0x6   : > { %p245_p4 = scmp.lt.s32.totalorder (!%p196_p3), %s970_s12, 1 }
   0x7   : > { %199 = sbr.rel (%p196_p3) target bundleno = 280 (0x118), region = 32 }
   0xe   : > { %s1087_s12 = smov (!%p245_p4, %s970_s12), 1 }
   0xf   : > { %s1021_s16 = sshll.u32 %s1087_s12, 6  ;;  %s267_s25 = scalar_lea.vmem %s1080_s2, %s1087_s12 }
  0x10   : > { %s1027_s19 = scalar_lea.vmem %s1079_s1, %s1021_s16  ;;  %s1036_s22 = scalar_lea.vmem %s1078_s0, %s1021_s16  ;;  %v751_v16 = vld [vmem:[%s267_s25] ss:$0 sm:$0xff] }
  0x11   : > { %v940_v0 = vld [vmem:[%s1027_s19] sm:$0xff]   ;;  %v941_v1 = vld [vmem:[%s1027_s19 + $0x8] sm:$0xff]   ;;  %v942_v2 = vld [vmem:[%s1027_s19 + $0x10] sm:$0xff]   ;;  %s1059_s28 = scalar_lea.vmem %s1081_s3, %s1021_s16 }
  0x12   : > { %868 = vmatprep.subr.bf16.mxu0 %v940_v0  ;;  %900 = vmatprep.subr.bf16.mxu1 %v940_v0  ;;  %v943_v3 = vld [vmem:[%s1027_s19 + $0x18] sm:$0xff]   ;;  %v948_v4 = vld [vmem:[%s1036_s22] sm:$0xff]   ;;  %v945_v7 = vld [vmem:[%s1027_s19 + $0x28] sm:$0xff]  }
  0x13   : > { %869 = vmatpush3.bf16.msra.mxu0 %v940_v0  ;;  %908 = vmatpush3.bf16.msra.mxu1 %v940_v0  ;;  %v949_v5 = vld [vmem:[%s1036_s22 + $0x20] sm:$0xff]   ;;  %v946_v8 = vld [vmem:[%s1027_s19 + $0x30] sm:$0xff]   ;;  %v947_v9 = vld [vmem:[%s1027_s19 + $0x38] sm:$0xff]  }
  0x14   : > { %870 = vmatprep.subr.bf16.mxu0 %v941_v1  ;;  %901 = vmatprep.subr.bf16.mxu1 %v941_v1  ;;  %v944_v6 = vld [vmem:[%s1027_s19 + $0x20] sm:$0xff]   ;;  %v950_v10 = vld [vmem:[%s1036_s22 + $0x8] sm:$0xff]   ;;  %v952_v12 = vld [vmem:[%s1036_s22 + $0x10] sm:$0xff]  }
  0x15   : > { %884 = vmatprep.mubr.bf16.mxu0 %v948_v4  ;;  %892 = vmatprep.mubr.bf16.mxu1 %v949_v5  ;;  %v951_v11 = vld [vmem:[%s1036_s22 + $0x28] sm:$0xff]   ;;  %v953_v13 = vld [vmem:[%s1036_s22 + $0x30] sm:$0xff]   ;;  %v954_v14 = vld [vmem:[%s1036_s22 + $0x18] sm:$0xff]  }
  0x16   : > { %v955_v15 = vld [vmem:[%s1036_s22 + $0x38] sm:$0xff]  }
  0x17   : > { %871 = vmatpush3.bf16.msra.mxu0 %v941_v1  ;;  %909 = vmatpush3.bf16.msra.mxu1 %v941_v1 }
  0x18   : > { %872 = vmatprep.subr.bf16.mxu0 %v942_v2  ;;  %902 = vmatprep.subr.bf16.mxu1 %v942_v2 }
  0x1b   : > { %873 = vmatpush3.bf16.msra.mxu0 %v942_v2  ;;  %910 = vmatpush3.bf16.msra.mxu1 %v942_v2 }
  0x1c   : > { %874 = vmatprep.subr.bf16.mxu0 %v943_v3  ;;  %903 = vmatprep.subr.bf16.mxu1 %v943_v3 }
  0x1f   : > { %875 = vmatpush3.bf16.msra.mxu0 %v943_v3  ;;  %911 = vmatpush3.bf16.msra.mxu1 %v943_v3 }
  0x20   : > { %876 = vmatprep.subr.bf16.mxu0 %v944_v6  ;;  %904 = vmatprep.subr.bf16.mxu1 %v944_v6 }
  0x23   : > { %877 = vmatpush3.bf16.msra.mxu0 %v944_v6  ;;  %912 = vmatpush3.bf16.msra.mxu1 %v944_v6 }
  0x24   : > { %878 = vmatprep.subr.bf16.mxu0 %v945_v7  ;;  %905 = vmatprep.subr.bf16.mxu1 %v945_v7 }
  0x27   : > { %879 = vmatpush3.bf16.msra.mxu0 %v945_v7  ;;  %913 = vmatpush3.bf16.msra.mxu1 %v945_v7 }
  0x28   : > { %880 = vmatprep.subr.bf16.mxu0 %v946_v8  ;;  %906 = vmatprep.subr.bf16.mxu1 %v946_v8 }
  0x2b   : > { %881 = vmatpush3.bf16.msra.mxu0 %v946_v8  ;;  %914 = vmatpush3.bf16.msra.mxu1 %v946_v8 }
  0x2c   : > { %882 = vmatprep.subr.bf16.mxu0 %v947_v9  ;;  %907 = vmatprep.subr.bf16.mxu1 %v947_v9 }
  0x2f   : > { %883 = vmatpush3.bf16.msra.mxu0 %v947_v9  ;;  %915 = vmatpush3.bf16.msra.mxu1 %v947_v9 }
  0x32   : > { %885 = vmatmul.mubr.bf16.vlgmr.msra.gmra.mrb[0].mxu0 %v950_v10  ;;  %893 = vmatmul.mubr.bf16.vlgmr.msra.gmra.mrb[0].mxu1 %v951_v11 }
  0x33   : > { %888 = vmatprep.mubr.bf16.mxu0 %v952_v12  ;;  %896 = vmatprep.mubr.bf16.mxu1 %v953_v13 }
  0x3a   : > { %889 = vmatmul.mubr.bf16.gmra.mrb[4].mxu0 %v954_v14  ;;  %897 = vmatmul.mubr.bf16.gmra.mrb[4].mxu1 %v955_v15 }
 0x105   : > { %v886_v17 = vpop.f32.mrb[0].mxu0  ;;  %v894_v18 = vpop.f32.mrb[0].mxu1 }
 0x106   : > { %v460_v19 = vadd.f32 %v886_v17, %v751_v16  ;;  %v492_v20 = vadd.f32 %v894_v18, %v751_v16  ;;  %v451_v21 = vpop.f32.mrb[1].mxu0  ;;  %v483_v22 = vpop.f32.mrb[1].mxu1 }
 0x107   : > { %v452_v23 = vadd.f32 %v751_v16, %v451_v21  ;;  %v484_v24 = vadd.f32 %v751_v16, %v483_v22  ;;  %v887_v25 = vpop.f32.mrb[2].mxu0  ;;  %v895_v26 = vpop.f32.mrb[2].mxu1 }
 0x108   : > { %v463_v27 = vadd.f32 %v887_v25, %v751_v16  ;;  %v495_v28 = vadd.f32 %v895_v26, %v751_v16  ;;  %v454_v29 = vpop.f32.mrb[3].mxu0  ;;  %v486_v30 = vpop.f32.mrb[3].mxu1  ;;  %v516_v33 = vmax.f32 %v460_v19, 0.0  ;;  %v524_v34 = vmax.f32 %v492_v20, 0.0 }
 0x109   : > { %v455_v31 = vadd.f32 %v751_v16, %v454_v29  ;;  %v487_v32 = vadd.f32 %v751_v16, %v486_v30  ;;  %v514_v37 = vmax.f32 %v452_v23, 0.0  ;;  %v522_v38 = vmax.f32 %v484_v24, 0.0 }
 0x10a   : > { %v517_v35 = vmax.f32 %v463_v27, 0.0  ;;  %v525_v36 = vmax.f32 %v495_v28, 0.0 }
 0x10b   : > { %v515_v39 = vmax.f32 %v455_v31, 0.0  ;;  %v523_v40 = vmax.f32 %v487_v32, 0.0 }
 0x10c   : > { %v813_v41 = vpack.c.bf16 %v517_v35, %v516_v33  ;;  %v833_v42 = vpack.c.bf16 %v525_v36, %v524_v34 }
 0x10d   : > { %v808_v43 = vpack.c.bf16 %v515_v39, %v514_v37  ;;  %v828_v44 = vpack.c.bf16 %v523_v40, %v522_v38  ;;  %v890_v45 = vpop.f32.mrb[4].mxu0  ;;  %v898_v46 = vpop.f32.mrb[4].mxu1 }
 0x10e   : > { %845 = vst [vmem:[%s1059_s28 + $0x8] sm:$0xff] %v813_v41   ;;  %849 = vst [vmem:[%s1059_s28 + $0x28] sm:$0xff] %v833_v42   ;;  %v476_v47 = vadd.f32 %v890_v45, %v751_v16  ;;  %v508_v48 = vadd.f32 %v898_v46, %v751_v16  ;;  %v467_v49 = vpop.f32.mrb[5].mxu0  ;;  %v499_v50 = vpop.f32.mrb[5].mxu1 }
 0x10f   : > { %809 = vst [vmem:[%s1059_s28] sm:$0xff] %v808_v43   ;;  %848 = vst [vmem:[%s1059_s28 + $0x20] sm:$0xff] %v828_v44   ;;  %v468_v51 = vadd.f32 %v751_v16, %v467_v49  ;;  %v500_v52 = vadd.f32 %v751_v16, %v499_v50  ;;  %v891_v53 = vpop.f32.mrb[6].mxu0  ;;  %v899_v54 = vpop.f32.mrb[6].mxu1 }
 0x110   : > { %v479_v55 = vadd.f32 %v891_v53, %v751_v16  ;;  %v511_v56 = vadd.f32 %v899_v54, %v751_v16  ;;  %v470_v57 = vpop.f32.mrb[7].mxu0  ;;  %v502_v58 = vpop.f32.mrb[7].mxu1  ;;  %v520_v61 = vmax.f32 %v476_v47, 0.0  ;;  %v528_v62 = vmax.f32 %v508_v48, 0.0 }
 0x111   : > { %v471_v59 = vadd.f32 %v751_v16, %v470_v57  ;;  %v503_v60 = vadd.f32 %v751_v16, %v502_v58  ;;  %v518_v1 = vmax.f32 %v468_v51, 0.0  ;;  %v526_v2 = vmax.f32 %v500_v52, 0.0 }
 0x112   : > { %v521_v63 = vmax.f32 %v479_v55, 0.0  ;;  %v529_v0 = vmax.f32 %v511_v56, 0.0 }
 0x113   : > { %v519_v3 = vmax.f32 %v471_v59, 0.0  ;;  %v527_v4 = vmax.f32 %v503_v60, 0.0 }
 0x114   : > { %v823_v5 = vpack.c.bf16 %v521_v63, %v520_v61  ;;  %v843_v6 = vpack.c.bf16 %v529_v0, %v528_v62 }
 0x115   : > { %v818_v7 = vpack.c.bf16 %v519_v3, %v518_v1  ;;  %v838_v8 = vpack.c.bf16 %v527_v4, %v526_v2 }
 0x116   : > { %847 = vst [vmem:[%s1059_s28 + $0x18] sm:$0xff] %v823_v5   ;;  %851 = vst [vmem:[%s1059_s28 + $0x38] sm:$0xff] %v843_v6  }
 0x117   : > { %846 = vst [vmem:[%s1059_s28 + $0x10] sm:$0xff] %v818_v7   ;;  %850 = vst [vmem:[%s1059_s28 + $0x30] sm:$0xff] %v838_v8  }
 0x118 PF: > { %s13_s14 = sadd.s32 1, %s978_s14   ;;  %s1082_s12 = smov %s974_s13 }
 0x119   : > { %p10_p5 = scmp.ge.s32.totalorder %s13_s14, 4   ;;  %s1083_s13 = smov %s1085_s15 }
 0x11b   :  { %12 = sbr.rel (!%p10_p5) target bundleno = 2 (0x2), region = 68 }

// kernel: _lambda_.7
= control target key start
LH: loop header
LB: loop body
LE: loop exit
PB: predicated region body
PF: predicated region fallthrough
CT: control target
= control target key end

     0   :  { %s692_s12 = smov 0   ;;  %s694_s13 = smov 0   ;;  %s759_s0 = inlined_call_operand.vmem [shape: bf16[1,32,128], index: 0, kind: input, shape index: {}]   ;;  %s760_s1 = inlined_call_operand.vmem [shape: bf16[1,128,128], index: 1, kind: input, shape index: {}]   ;;  %s761_s2 = inlined_call_operand.vmem [shape: f32[1,1,128], index: 2, kind: input, shape index: {}]   ;;  %s762_s3 = inlined_call_operand.vmem [shape: bf16[1,32,128], index: 3, kind: output, shape index: {}]  }
   0x1   :  { %s696_s14 = smov 0  }
   0x2 LB: > { %s28_s15 = sadd.s32 1, %s664_s13  ;;  %p556_p0 = scmp.ge.s32.totalorder %s668_s14, 1  ;;  %s668_s14 = sphi %s696_s14, %s13_s14   ;;  %s664_s13 = sphi %s694_s13, %s764_s13   ;;  %s660_s12 = sphi %s692_s12, %s763_s12  }
   0x3   : > { %p30_p1 = scmp.ge.s32.totalorder %s28_s15, 2  ;;  %p195_p2 = scmp.lt.s32.totalorder %s668_s14, 3 }
   0x5   : > { %s766_s15 = smov (%p30_p1, %s28_s15), 0  ;;  %p196_p3 = pnand %p556_p0, %p195_p2 }
   0x6   : > { %v637_v0 = vld [vmem:[%s760_s1] sm:$0xff] (!%p196_p3)   ;;  %v670_v1 = vmov (!%p196_p3), 0.0   ;;  %v638_v2 = vld [vmem:[%s760_s1 + $0x8] sm:$0xff] (!%p196_p3)   ;;  %vm671_vm0 = vmmov (!%p196_p3), 0   ;;  %s557_s20 = sshll.u32 (!%p196_p3), %s660_s12, 1  ;;  %v639_v3 = vld [vmem:[%s760_s1 + $0x10] sm:$0xff] (!%p196_p3)  }
   0x7   : > { %199 = sbr.rel (%p196_p3) target bundleno = 260 (0x104), region = 32  ;;  %591 = vmatprep.subr.bf16.mxu0 (!%p196_p3), %v670_v1  ;;  %607 = vmatprep.mubr.msk.bf16.mxu0 (!%p196_p3), %vm671_vm0, %v670_v1  ;;  %p247_p4 = scmp.lt.s32.totalorder (!%p196_p3), %s557_s20, 3  ;;  %v640_v4 = vld [vmem:[%s760_s1 + $0x18] sm:$0xff] (!%p196_p3)   ;;  %v641_v5 = vld [vmem:[%s760_s1 + $0x20] sm:$0xff] (!%p196_p3)   ;;  %v642_v6 = vld [vmem:[%s760_s1 + $0x28] sm:$0xff] (!%p196_p3)  }
   0x8   : > { %592 = vmatpush3.bf16.msra.mxu0 (!%p196_p3), %v637_v0  ;;  %v643_v7 = vld [vmem:[%s760_s1 + $0x30] sm:$0xff] (!%p196_p3)   ;;  %v644_v8 = vld [vmem:[%s760_s1 + $0x38] sm:$0xff] (!%p196_p3)   ;;  %v561_v10 = vld [vmem:[%s761_s2] ss:$0 sm:$0xff] (!%p196_p3) }
   0x9   : > { %593 = vmatprep.subr.bf16.mxu0 (!%p196_p3), %v670_v1 }
   0xc   : > { %594 = vmatpush3.bf16.msra.mxu0 (!%p196_p3), %v638_v2 }
   0xd   : > { %595 = vmatprep.subr.bf16.mxu0 (!%p196_p3), %v670_v1 }
   0xe   : > { %s768_s20 = smov (!%p247_p4, %s557_s20), 3 }
   0xf   : > { %s558_s23 = sshll.u32 %s768_s20, 2 }
  0x10   : > { %s252_s26 = scalar_lea.vmem %s759_s0, %s558_s23  ;;  %596 = vmatpush3.bf16.msra.mxu0 %v639_v3  ;;  %s279_s17 = scalar_lea.vmem %s762_s3, %s558_s23 }
  0x11   : > { %597 = vmatprep.subr.bf16.mxu0 %v670_v1  ;;  %v645_v9 = vld [vmem:[%s252_s26] sm:$0xff]  }
  0x14   : > { %598 = vmatpush3.bf16.msra.mxu0 %v640_v4 }
  0x15   : > { %599 = vmatprep.subr.bf16.mxu0 %v670_v1 }
  0x18   : > { %600 = vmatpush3.bf16.msra.mxu0 %v641_v5 }
  0x19   : > { %601 = vmatprep.subr.bf16.mxu0 %v670_v1 }
  0x1c   : > { %602 = vmatpush3.bf16.msra.mxu0 %v642_v6 }
  0x1d   : > { %603 = vmatprep.subr.bf16.mxu0 %v670_v1 }
  0x20   : > { %604 = vmatpush3.bf16.msra.mxu0 %v643_v7 }
  0x21   : > { %605 = vmatprep.subr.bf16.mxu0 %v670_v1 }
  0x24   : > { %606 = vmatpush3.bf16.msra.mxu0 %v644_v8 }
  0x27   : > { %608 = vmatmul.mubr.bf16.vlgmr.msra.gmra.mrb[0].mxu0 %v645_v9 }
  0xfa   : > { %v395_v11 = vpop.f32.mrb[0].mxu0 }
  0xfb   : > { %v396_v12 = vadd.f32 %v561_v10, %v395_v11  ;;  %v609_v13 = vpop.f32.mrb[1].mxu0 }
  0xfc   : > { %v398_v14 = vpop.f32.mrb[2].mxu0 }
  0xfd   : > { %v399_v15 = vadd.f32 %v561_v10, %v398_v14  ;;  %v610_v16 = vpop.f32.mrb[3].mxu0  ;;  %v402_v17 = vmax.f32 %v396_v12, 0.0 }
  0xff   : > { %v403_v18 = vmax.f32 %v399_v15, 0.0 }
 0x101   : > { %v580_v19 = vpack.c.bf16 %v403_v18, %v402_v17 }
 0x103   : > { %581 = vst [vmem:[%s279_s17] sm:$0xff] %v580_v19  }
 0x104 PF: > { %s13_s14 = sadd.s32 1, %s668_s14   ;;  %s763_s12 = smov %s664_s13 }
 0x105   : > { %p10_p5 = scmp.ge.s32.totalorder %s13_s14, 4   ;;  %s764_s13 = smov %s766_s15 }
 0x107   :  { %12 = sbr.rel (!%p10_p5) target bundleno = 2 (0x2), region = 68 }

// kernel: _lambda_.8
= control target key start
LH: loop header
LB: loop body
LE: loop exit
PB: predicated region body
PF: predicated region fallthrough
CT: control target
= control target key end

     0   :  { %s339_s1 = inlined_call_operand.vmem [shape: bf16[1,256,128], index: 1, kind: input, shape index: {}]   ;;  %s340_s0 = inlined_call_operand.vmem [shape: bf16[1,8,256], index: 0, kind: input, shape index: {}]   ;;  %s341_s2 = inlined_call_operand.vmem [shape: f32[1,1,128], index: 2, kind: input, shape index: {}]   ;;  %s342_s3 = inlined_call_operand.vmem [shape: f32[1,8,128], index: 3, kind: output, shape index: {}]  }
   0x1   :  { %v244_v0 = vld [vmem:[%s339_s1 + $0x40] sm:$0xff]   ;;  %v246_v2 = vld [vmem:[%s339_s1 + $0x48] sm:$0xff]   ;;  %v248_v4 = vld [vmem:[%s339_s1 + $0x50] sm:$0xff]  }
   0x2   :  { %v245_v1 = vld [vmem:[%s339_s1] sm:$0xff]   ;;  %222 = vmatprep.subr.bf16.mxu0 %v244_v0  ;;  %v247_v3 = vld [vmem:[%s339_s1 + $0x8] sm:$0xff]   ;;  %v249_v5 = vld [vmem:[%s339_s1 + $0x10] sm:$0xff]  }
   0x3   :  { %223 = vmatpush3.bf16.msra.mxu0 %v245_v1  ;;  %v250_v6 = vld [vmem:[%s339_s1 + $0x58] sm:$0xff]   ;;  %v252_v8 = vld [vmem:[%s339_s1 + $0x60] sm:$0xff]   ;;  %v254_v10 = vld [vmem:[%s339_s1 + $0x68] sm:$0xff]  }
   0x4   :  { %224 = vmatprep.subr.bf16.mxu0 %v246_v2  ;;  %v251_v7 = vld [vmem:[%s339_s1 + $0x18] sm:$0xff]   ;;  %v253_v9 = vld [vmem:[%s339_s1 + $0x20] sm:$0xff]   ;;  %v255_v13 = vld [vmem:[%s339_s1 + $0x28] sm:$0xff]  }
   0x5   :  { %v15_v11 = vld [vmem:[%s340_s0] sm:$0xff]  ;;  %v256_v14 = vld [vmem:[%s339_s1 + $0x70] sm:$0xff]   ;;  %v258_v16 = vld [vmem:[%s339_s1 + $0x78] sm:$0xff]  }
   0x6   :  { %v205_v12 = vcombine.high %v15_v11, %v15_v11  ;;  %v257_v15 = vld [vmem:[%s339_s1 + $0x30] sm:$0xff]   ;;  %v259_v17 = vld [vmem:[%s339_s1 + $0x38] sm:$0xff]   ;;  %v204_v18 = vcombine.low %v15_v11, %v15_v11  ;;  %v203_v20 = vld [vmem:[%s341_s2] ss:$0 sm:$0xff] }
   0x7   :  { %225 = vmatpush3.bf16.msra.mxu0 %v247_v3 }
   0x8   :  { %226 = vmatprep.subr.bf16.mxu0 %v248_v4  ;;  %190 = vmatprep.mubr.bf16.mxu0 %v205_v12 }
   0xb   :  { %227 = vmatpush3.bf16.msra.mxu0 %v249_v5 }
   0xc   :  { %228 = vmatprep.subr.bf16.mxu0 %v250_v6 }
   0xf   :  { %229 = vmatpush3.bf16.msra.mxu0 %v251_v7 }
  0x10   :  { %230 = vmatprep.subr.bf16.mxu0 %v252_v8 }
  0x13   :  { %231 = vmatpush3.bf16.msra.mxu0 %v253_v9 }
  0x14   :  { %232 = vmatprep.subr.bf16.mxu0 %v254_v10 }
  0x17   :  { %233 = vmatpush3.bf16.msra.mxu0 %v255_v13 }
  0x18   :  { %234 = vmatprep.subr.bf16.mxu0 %v256_v14 }
  0x1b   :  { %235 = vmatpush3.bf16.msra.mxu0 %v257_v15 }
  0x1c   :  { %236 = vmatprep.subr.bf16.mxu0 %v258_v16 }
  0x1f   :  { %237 = vmatpush3.bf16.msra.mxu0 %v259_v17 }
  0x22   :  { %191 = vmatmul.mubr.bf16.vlgmr.msra.gmra.mrb[0].mxu0 %v204_v18 }
  0xf5   :  { %v238_v19 = vpop.f32.mrb[0].mxu0 }
  0xf6   :  { %v239_v21 = vpop.f32.mrb[1].mxu0 }
  0xf7   :  { %v240_v22 = vadd.f32 %v239_v21, %v238_v19  ;;  %v241_v23 = vpop.f32.mrb[2].mxu0 }
  0xf8   :  { %v242_v24 = vpop.f32.mrb[3].mxu0 }
  0xf9   :  { %v193_v25 = vadd.f32 %v240_v22, %v203_v20 }
  0xfb   :  { %198 = vst [vmem:[%s342_s3] sm:$0xff] %v193_v25 }

// kernel: _lambda_.9
= control target key start
LH: loop header
LB: loop body
LE: loop exit
PB: predicated region body
PF: predicated region fallthrough
CT: control target
= control target key end

     0   :  { %vm38_vm0 = vcmask 1043456   ;;  %v110_v1 = vmov 0   ;;  %vm34_vm1 = vcmask 64512   ;;  %v19_v6 = vlaneseq  ;;  %s143_s1 = inlined_call_operand.vmem [shape: bf16[1,8,256], index: 1, kind: input, shape index: {}]   ;;  %s144_s0 = inlined_call_operand.vmem [shape: bf16[1,8,8], index: 0, kind: input, shape index: {}]   ;;  %s145_s2 = inlined_call_operand.vmem [shape: f32[1,1,256], index: 2, kind: input, shape index: {}]   ;;  %s146_s3 = inlined_call_operand.vmem [shape: bf16[1,8,256], index: 3, kind: output, shape index: {}]  }
   0x1   :  { %v16_v0 = vld [vmem:[%s143_s1] sm:$0xff]  ;;  %77 = vmatprep.mubr.bf16.mxu0 %v110_v1 }
   0x2   :  { %v102_v2 = vcombine.high %v16_v0, %v16_v0  ;;  %v101_v3 = vcombine.low %v16_v0, %v16_v0  ;;  %v15_v5 = vld [vmem:[%s144_s0] sm:$0xf]  ;;  %v20_v7 = vshrl.u32 %v19_v6, 7 }
   0x3   :  { %v17_v9 = vld [vmem:[%s145_s2] sm:$0x3] }
   0x4   :  { %103 = vmatprep.subr.msk.bf16.mxu0 %vm38_vm0, %v102_v2  ;;  %v40_v4 = vsel %vm38_vm0, %v101_v3, 0  ;;  %v21_v8 = vsub.s32 0, %v20_v7  ;;  %v25_v10 = vsub.s32 1, %v20_v7 }
   0x5   :  { %46 = vmatpush1.bf16.msra.mxu0 %v40_v4 }
   0x6   :  { %v22_v11 = vrot.slane %v17_v9, %v21_v8  ;;  %v26_v12 = vrot.slane %v17_v9, %v25_v10 }
   0x8   :  { %104 = vmatmul.mubr.msk.bf16.vlgmr.msra.gmra.mrb[0].mxu0 %vm34_vm1, %v15_v5 }
  0xdb   :  { %v79_v13 = vpop.f32.mrb[0].mxu0 }
  0xdc   :  { %v80_v14 = vadd.f32 %v79_v13, %v22_v11  ;;  %v81_v15 = vpop.f32.mrb[1].mxu0 }
  0xdd   :  { %v82_v16 = vadd.f32 %v81_v15, %v26_v12  ;;  %v83_v17 = vpop.f32.mrb[2].mxu0 }
  0xde   :  { %v86_v18 = vmax.f32 %v80_v14, 0.0  ;;  %v84_v19 = vpop.f32.mrb[3].mxu0 }
  0xdf   :  { %v87_v20 = vmax.f32 %v82_v16, 0.0 }
  0xe1   :  { %v106_v21 = vpack.c.bf16 %v87_v20, %v86_v18 }
  0xe3   :  { %96 = vst [vmem:[%s146_s3] sm:$0xff] %v106_v21 }

// kernel: _lambda_.10
= control target key start
LH: loop header
LB: loop body
LE: loop exit
PB: predicated region body
PF: predicated region fallthrough
CT: control target
= control target key end

     0   :  { %s765_s12 = smov 0   ;;  %s767_s13 = smov 0   ;;  %s824_s0 = inlined_call_operand.vmem [shape: bf16[1,112,64], index: 0, kind: input, shape index: {}]   ;;  %s825_s1 = inlined_call_operand.vmem [shape: bf16[1,64,128], index: 1, kind: input, shape index: {}]   ;;  %s826_s2 = inlined_call_operand.vmem [shape: f32[1,1,128], index: 2, kind: input, shape index: {}]   ;;  %s827_s3 = inlined_call_operand.vmem [shape: bf16[1,112,128], index: 3, kind: output, shape index: {}]  }
   0x1   :  { %s769_s14 = smov 0  }
   0x2 LB: > { %s28_s15 = sadd.s32 1, %s739_s13  ;;  %p608_p0 = scmp.ge.s32.totalorder %s743_s14, 1  ;;  %s743_s14 = sphi %s769_s14, %s13_s14   ;;  %s739_s13 = sphi %s767_s13, %s829_s13   ;;  %s735_s12 = sphi %s765_s12, %s828_s12  }
   0x3   : > { %p30_p1 = scmp.ge.s32.totalorder %s28_s15, 2  ;;  %p195_p2 = scmp.lt.s32.totalorder %s743_s14, 3 }
   0x5   : > { %s831_s15 = smov (%p30_p1, %s28_s15), 0  ;;  %p196_p3 = pnand %p608_p0, %p195_p2 }
   0x6   : > { %v713_v0 = vld [vmem:[%s825_s1] sm:$0xff] (!%p196_p3)   ;;  %s244_s18 = smul.u32 (!%p196_p3), 7, %s735_s12  ;;  %v714_v1 = vld [vmem:[%s825_s1 + $0x8] sm:$0xff] (!%p196_p3)   ;;  %v715_v2 = vld [vmem:[%s825_s1 + $0x10] sm:$0xff] (!%p196_p3)   ;;  %vm346_vm0 = vcmask (!%p196_p3), 523264  }
   0x7   : > { %199 = sbr.rel (%p196_p3) target bundleno = 245 (0xf5), region = 32  ;;  %665 = vmatprep.subr.bf16.mxu0 (!%p196_p3), %v713_v0  ;;  %681 = vmatprep.subr.bf16.mxu1 (!%p196_p3), %v713_v0  ;;  %v716_v3 = vld [vmem:[%s825_s1 + $0x18] sm:$0xff] (!%p196_p3)   ;;  %v611_v8 = vld [vmem:[%s826_s2] ss:$0 sm:$0xff] (!%p196_p3) }
   0x8   : > { %p247_p4 = scmp.lt.s32.totalorder (!%p196_p3), %s244_s18, 13  ;;  %666 = vmatpush3.bf16.msra.mxu0 (!%p196_p3), %v713_v0  ;;  %685 = vmatpush3.bf16.msra.mxu1 (!%p196_p3), %v713_v0 }
   0x9   : > { %667 = vmatprep.subr.bf16.mxu0 (!%p196_p3), %v714_v1  ;;  %682 = vmatprep.subr.bf16.mxu1 (!%p196_p3), %v714_v1 }
   0xc   : > { %668 = vmatpush3.bf16.msra.mxu0 (!%p196_p3), %v714_v1  ;;  %686 = vmatpush3.bf16.msra.mxu1 (!%p196_p3), %v714_v1 }
   0xd   : > { %669 = vmatprep.subr.bf16.mxu0 (!%p196_p3), %v715_v2  ;;  %683 = vmatprep.subr.bf16.mxu1 (!%p196_p3), %v715_v2 }
   0xe   : > { %s833_s18 = smov (!%p247_p4, %s244_s18), 13 }
   0xf   : > { %s609_s23 = sshll.u32 %s833_s18, 2 }
  0x10   : > { %s252_s28 = scalar_lea.vmem %s824_s0, %s609_s23  ;;  %670 = vmatpush3.bf16.msra.mxu0 %v715_v2  ;;  %687 = vmatpush3.bf16.msra.mxu1 %v715_v2  ;;  %s279_s6 = scalar_lea.vmem %s827_s3, %s609_s23 }
  0x11   : > { %v717_v4 = vld [vmem:[%s252_s28] sm:$0xff]   ;;  %v718_v5 = vld [vmem:[%s252_s28 + $0x10] sm:$0xff]   ;;  %671 = vmatprep.subr.bf16.mxu0 %v716_v3  ;;  %684 = vmatprep.subr.bf16.mxu1 %v716_v3  ;;  %v719_v6 = vld [vmem:[%s252_s28 + $0x8] sm:$0xff]  }
  0x12   : > { %673 = vmatprep.mubr.msk.bf16.mxu0 %vm346_vm0, %v717_v4  ;;  %677 = vmatprep.mubr.msk.bf16.mxu1 %vm346_vm0, %v718_v5  ;;  %v720_v7 = vld [vmem:[%s252_s28 + $0x18] ss:$0 sps:$4 sm:$0xff]  }
  0x14   : > { %672 = vmatpush3.bf16.msra.mxu0 %v716_v3  ;;  %688 = vmatpush3.bf16.msra.mxu1 %v716_v3 }
  0x17   : > { %674 = vmatmul.mubr.msk.bf16.vlgmr.msra.gmra.mrb[0].mxu0 %vm346_vm0, %v719_v6  ;;  %678 = vmatmul.mubr.msk.bf16.vlgmr.msra.gmra.mrb[0].mxu1 %vm346_vm0, %v720_v7 }
  0xea   : > { %v675_v9 = vpop.f32.mrb[0].mxu0  ;;  %v679_v10 = vpop.f32.mrb[0].mxu1 }
  0xeb   : > { %v402_v11 = vadd.f32 %v675_v9, %v611_v8  ;;  %v418_v12 = vadd.f32 %v679_v10, %v611_v8  ;;  %v393_v13 = vpop.f32.mrb[1].mxu0  ;;  %v409_v14 = vpop.f32.mrb[1].mxu1 }
  0xec   : > { %v394_v15 = vadd.f32 %v611_v8, %v393_v13  ;;  %v410_v16 = vadd.f32 %v611_v8, %v409_v14  ;;  %v676_v17 = vpop.f32.mrb[2].mxu0  ;;  %v680_v18 = vpop.f32.mrb[2].mxu1 }
  0xed   : > { %v429_v19 = vmax.f32 %v418_v12, 0.0  ;;  %v405_v20 = vadd.f32 %v676_v17, %v611_v8  ;;  %v396_v21 = vpop.f32.mrb[3].mxu0  ;;  %v412_v22 = vpop.f32.mrb[3].mxu1  ;;  %v425_v25 = vmax.f32 %v402_v11, 0.0 }
  0xee   : > { %v397_v23 = vadd.f32 %v611_v8, %v396_v21  ;;  %v413_v24 = vadd.f32 %v611_v8, %v412_v22  ;;  %v423_v28 = vmax.f32 %v394_v15, 0.0  ;;  %v427_v29 = vmax.f32 %v410_v16, 0.0 }
  0xef   : > { %v639_v26 = vpack.c.bf16 %v429_v19, %v429_v19  ;;  %v426_v27 = vmax.f32 %v405_v20, 0.0 }
  0xf0   : > { %v424_v30 = vmax.f32 %v397_v23, 0.0  ;;  %v428_v31 = vmax.f32 %v413_v24, 0.0 }
  0xf1   : > { %465 = vst [vmem:[%s279_s6 + $0x18] sm:$0xf] %v639_v26  ;;  %v648_v32 = vpack.c.bf16 %v426_v27, %v425_v25 }
  0xf2   : > { %v643_v33 = vpack.c.bf16 %v424_v30, %v423_v28  ;;  %v653_v34 = vpack.c.bf16 %v428_v31, %v427_v29 }
  0xf3   : > { %655 = vst [vmem:[%s279_s6 + $0x8] sm:$0xff] %v648_v32  }
  0xf4   : > { %644 = vst [vmem:[%s279_s6] sm:$0xff] %v643_v33   ;;  %656 = vst [vmem:[%s279_s6 + $0x10] sm:$0xff] %v653_v34  }
  0xf5 PF: > { %s13_s14 = sadd.s32 1, %s743_s14   ;;  %s828_s12 = smov %s739_s13 }
  0xf6   : > { %p10_p5 = scmp.ge.s32.totalorder %s13_s14, 4   ;;  %s829_s13 = smov %s831_s15 }
  0xf8   :  { %12 = sbr.rel (!%p10_p5) target bundleno = 2 (0x2), region = 68 }

// kernel: _lambda_.11
= control target key start
LH: loop header
LB: loop body
LE: loop exit
PB: predicated region body
PF: predicated region fallthrough
CT: control target
= control target key end

     0   :  { %s1631_s12 = smov 0   ;;  %s1633_s13 = smov 0   ;;  %s1984_s0 = inlined_call_operand.vmem [shape: bf16[2,584,64], index: 0, kind: input, shape index: {}]   ;;  %s1985_s1 = inlined_call_operand.vmem [shape: bf16[2,64,128], index: 1, kind: input, shape index: {}]   ;;  %s1986_s2 = inlined_call_operand.vmem [shape: f32[2,1,128], index: 2, kind: input, shape index: {}]   ;;  %s1987_s3 = inlined_call_operand.vmem [shape: f32[2,584,128], index: 3, kind: output, shape index: {}]  }
   0x1   :  { %s1635_s14 = smov 0  }
   0x2 LB: > { %s32_s15 = sadd.s32 1, %s1603_s13  ;;  %p1224_p0 = scmp.ge.s32.totalorder %s1607_s14, 1  ;;  %s1607_s14 = sphi %s1635_s14, %s13_s14   ;;  %s1603_s13 = sphi %s1633_s13, %s1989_s13   ;;  %s1599_s12 = sphi %s1631_s12, %s1988_s12  }
   0x3   : > { %p34_p1 = scmp.ge.s32.totalorder %s32_s15, 2  ;;  %p195_p2 = scmp.lt.s32.totalorder %s1607_s14, 3 }
   0x5   : > { %s1991_s15 = smov (%p34_p1, %s32_s15), 0  ;;  %p196_p3 = pnand %p1224_p0, %p195_p2 }
   0x6   : > { %p245_p4 = scmp.lt.s32.totalorder (!%p196_p3), %s1599_s12, 1  ;;  %v1609_v0 = vmov (!%p196_p3), 0.0   ;;  %vm1610_vm0 = vmmov (!%p196_p3), 0   ;;  %vm577_vm1 = vcmask (!%p196_p3), 523264  }
   0x7   : > { %199 = sbr.rel (%p196_p3) target bundleno = 394 (0x18a), region = 32  ;;  %1352 = vmatprep.subr.bf16.mxu0 (!%p196_p3), %v1609_v0  ;;  %1508 = vmatprep.subr.bf16.mxu1 (!%p196_p3), %v1609_v0 }
   0x8   : > { %1360 = vmatprep.mubr.msk.bf16.mxu0 (!%p196_p3), %vm1610_vm0, %v1609_v0  ;;  %1436 = vmatprep.mubr.msk.bf16.mxu1 (!%p196_p3), %vm1610_vm0, %v1609_v0 }
   0xe   : > { %s1993_s12 = smov (!%p245_p4, %s1599_s12), 1 }
   0xf   : > { %s1310_s16 = sshll.u32 %s1993_s12, 5  ;;  %s1516_s20 = smul.u32 292, %s1993_s12 }
  0x10   : > { %s261_s19 = scalar_lea.vmem %s1985_s1, %s1310_s16  ;;  %s267_s26 = scalar_lea.vmem %s1986_s2, %s1993_s12 }
  0x11   : > { %v1544_v1 = vld [vmem:[%s261_s19] sm:$0xff]   ;;  %v1545_v2 = vld [vmem:[%s261_s19 + $0x8] sm:$0xff]   ;;  %s1667_s23 = scalar_lea.vmem %s1984_s0, %s1516_s20  ;;  %v1546_v3 = vld [vmem:[%s261_s19 + $0x10] sm:$0xff]   ;;  %s1517_s27 = smul.u32 584, %s1993_s12 }
  0x12   : > { %1353 = vmatpush3.bf16.msra.mxu0 %v1544_v1  ;;  %1512 = vmatpush3.bf16.msra.mxu1 %v1544_v1  ;;  %v1547_v4 = vld [vmem:[%s261_s19 + $0x18] sm:$0xff]   ;;  %v1548_v5 = vld [vmem:[%s1667_s23] sm:$0xff]   ;;  %v1550_v7 = vld [vmem:[%s1667_s23 + $0x8] sm:$0xff]  }
  0x13   : > { %1354 = vmatprep.subr.bf16.mxu0 %v1609_v0  ;;  %1509 = vmatprep.subr.bf16.mxu1 %v1609_v0  ;;  %v1549_v6 = vld [vmem:[%s1667_s23 + $0x98] sm:$0xff]   ;;  %v1551_v8 = vld [vmem:[%s1667_s23 + $0xa0] sm:$0xff]   ;;  %v1552_v9 = vld [vmem:[%s1667_s23 + $0x10] sm:$0xff]   ;;  %s1827_s30 = scalar_lea.vmem %s1987_s3, %s1517_s27 }
  0x14   : > { %v1553_v10 = vld [vmem:[%s1667_s23 + $0xa8] sm:$0xff]   ;;  %v1554_v11 = vld [vmem:[%s1667_s23 + $0x18] sm:$0xff]   ;;  %v1555_v12 = vld [vmem:[%s1667_s23 + $0xb0] sm:$0xff]  }
  0x15   : > { %v1556_v13 = vld [vmem:[%s1667_s23 + $0x20] sm:$0xff]   ;;  %v1557_v14 = vld [vmem:[%s1667_s23 + $0xb8] sm:$0xff]   ;;  %v1558_v15 = vld [vmem:[%s1667_s23 + $0x28] sm:$0xff]  }
  0x16   : > { %1355 = vmatpush3.bf16.msra.mxu0 %v1545_v2  ;;  %1513 = vmatpush3.bf16.msra.mxu1 %v1545_v2  ;;  %v1559_v16 = vld [vmem:[%s1667_s23 + $0xc0] sm:$0xff]   ;;  %v1560_v17 = vld [vmem:[%s1667_s23 + $0x30] sm:$0xff]   ;;  %v1561_v18 = vld [vmem:[%s1667_s23 + $0xc8] sm:$0xff]  }
  0x17   : > { %1356 = vmatprep.subr.bf16.mxu0 %v1609_v0  ;;  %1510 = vmatprep.subr.bf16.mxu1 %v1609_v0  ;;  %v1562_v19 = vld [vmem:[%s1667_s23 + $0x38] sm:$0xff]   ;;  %v1563_v20 = vld [vmem:[%s1667_s23 + $0xd0] sm:$0xff]   ;;  %v1564_v21 = vld [vmem:[%s1667_s23 + $0x40] sm:$0xff]  }
  0x18   : > { %v1565_v22 = vld [vmem:[%s1667_s23 + $0xd8] sm:$0xff]   ;;  %v1566_v23 = vld [vmem:[%s1667_s23 + $0x48] sm:$0xff]   ;;  %v1567_v24 = vld [vmem:[%s1667_s23 + $0xe0] sm:$0xff]  }
  0x19   : > { %v1568_v25 = vld [vmem:[%s1667_s23 + $0x50] sm:$0xff]   ;;  %v1569_v26 = vld [vmem:[%s1667_s23 + $0xe8] sm:$0xff]   ;;  %v1570_v27 = vld [vmem:[%s1667_s23 + $0x58] sm:$0xff]  }
  0x1a   : > { %1357 = vmatpush3.bf16.msra.mxu0 %v1546_v3  ;;  %1514 = vmatpush3.bf16.msra.mxu1 %v1546_v3  ;;  %v1571_v28 = vld [vmem:[%s1667_s23 + $0xf0] sm:$0xff]   ;;  %v1572_v29 = vld [vmem:[%s1667_s23 + $0x60] sm:$0xff]   ;;  %v1573_v30 = vld [vmem:[%s1667_s23 + $0xf8] sm:$0xff]  }
  0x1b   : > { %1358 = vmatprep.subr.bf16.mxu0 %v1609_v0  ;;  %1511 = vmatprep.subr.bf16.mxu1 %v1609_v0  ;;  %v1574_v31 = vld [vmem:[%s1667_s23 + $0x68] sm:$0xff]   ;;  %v1575_v32 = vld [vmem:[%s1667_s23 + $0x100] sm:$0xff]   ;;  %v1576_v33 = vld [vmem:[%s1667_s23 + $0x70] sm:$0xff]  }
  0x1c   : > { %v1577_v34 = vld [vmem:[%s1667_s23 + $0x108] sm:$0xff]   ;;  %v1578_v35 = vld [vmem:[%s1667_s23 + $0x78] sm:$0xff]   ;;  %v1579_v36 = vld [vmem:[%s1667_s23 + $0x110] sm:$0xff]  }
  0x1d   : > { %v1580_v37 = vld [vmem:[%s1667_s23 + $0x80] sm:$0xff]   ;;  %v1581_v38 = vld [vmem:[%s1667_s23 + $0x118] sm:$0xff]   ;;  %v1582_v39 = vld [vmem:[%s1667_s23 + $0x88] sm:$0xff]  }
  0x1e   : > { %1359 = vmatpush3.bf16.msra.mxu0 %v1547_v4  ;;  %1515 = vmatpush3.bf16.msra.mxu1 %v1547_v4  ;;  %v1583_v40 = vld [vmem:[%s1667_s23 + $0x120] ss:$0 sps:$4 sm:$0xff]   ;;  %v1584_v41 = vld [vmem:[%s1667_s23 + $0x90] sm:$0xff]  }
  0x1f   : > { %v1822_v42 = vld [vmem:[%s267_s26] ss:$0 sm:$0xff] }
  0x21   : > { %1361 = vmatmul.mubr.msk.bf16.vlgmr.msra.gmra.mrb[0].mxu0 %vm577_vm1, %v1548_v5  ;;  %1437 = vmatmul.mubr.msk.bf16.vlgmr.msra.gmra.mrb[0].mxu1 %vm577_vm1, %v1549_v6 }
  0x22   : > { %1364 = vmatprep.mubr.msk.bf16.mxu0 %vm1610_vm0, %v1609_v0  ;;  %1440 = vmatprep.mubr.msk.bf16.mxu1 %vm1610_vm0, %v1609_v0 }
  0x29   : > { %1365 = vmatmul.mubr.msk.bf16.gmra.mrb[4].mxu0 %vm577_vm1, %v1550_v7  ;;  %1441 = vmatmul.mubr.msk.bf16.gmra.mrb[4].mxu1 %vm577_vm1, %v1551_v8 }
  0x2a   : > { %1368 = vmatprep.mubr.msk.bf16.mxu0 %vm1610_vm0, %v1609_v0  ;;  %1444 = vmatprep.mubr.msk.bf16.mxu1 %vm1610_vm0, %v1609_v0 }
  0x31   : > { %1369 = vmatmul.mubr.msk.bf16.gmra.mrb[8].mxu0 %vm577_vm1, %v1552_v9  ;;  %1445 = vmatmul.mubr.msk.bf16.gmra.mrb[8].mxu1 %vm577_vm1, %v1553_v10 }
  0x32   : > { %1372 = vmatprep.mubr.msk.bf16.mxu0 %vm1610_vm0, %v1609_v0  ;;  %1448 = vmatprep.mubr.msk.bf16.mxu1 %vm1610_vm0, %v1609_v0 }
  0x39   : > { %1373 = vmatmul.mubr.msk.bf16.gmra.mrb[12].mxu0 %vm577_vm1, %v1554_v11  ;;  %1449 = vmatmul.mubr.msk.bf16.gmra.mrb[12].mxu1 %vm577_vm1, %v1555_v12 }
  0x3a   : > { %1376 = vmatprep.mubr.msk.bf16.mxu0 %vm1610_vm0, %v1609_v0  ;;  %1452 = vmatprep.mubr.msk.bf16.mxu1 %vm1610_vm0, %v1609_v0 }
  0x41   : > { %1377 = vmatmul.mubr.msk.bf16.gmra.mrb[16].mxu0 %vm577_vm1, %v1556_v13  ;;  %1453 = vmatmul.mubr.msk.bf16.gmra.mrb[16].mxu1 %vm577_vm1, %v1557_v14 }
  0x42   : > { %1380 = vmatprep.mubr.msk.bf16.mxu0 %vm1610_vm0, %v1609_v0  ;;  %1456 = vmatprep.mubr.msk.bf16.mxu1 %vm1610_vm0, %v1609_v0 }
  0x49   : > { %1381 = vmatmul.mubr.msk.bf16.gmra.mrb[20].mxu0 %vm577_vm1, %v1558_v15  ;;  %1457 = vmatmul.mubr.msk.bf16.gmra.mrb[20].mxu1 %vm577_vm1, %v1559_v16 }
  0x4a   : > { %1384 = vmatprep.mubr.msk.bf16.mxu0 %vm1610_vm0, %v1609_v0  ;;  %1460 = vmatprep.mubr.msk.bf16.mxu1 %vm1610_vm0, %v1609_v0 }
  0x51   : > { %1385 = vmatmul.mubr.msk.bf16.gmra.mrb[24].mxu0 %vm577_vm1, %v1560_v17  ;;  %1461 = vmatmul.mubr.msk.bf16.gmra.mrb[24].mxu1 %vm577_vm1, %v1561_v18 }
  0x52   : > { %1388 = vmatprep.mubr.msk.bf16.mxu0 %vm1610_vm0, %v1609_v0  ;;  %1464 = vmatprep.mubr.msk.bf16.mxu1 %vm1610_vm0, %v1609_v0 }
  0x59   : > { %1389 = vmatmul.mubr.msk.bf16.gmra.mrb[28].mxu0 %vm577_vm1, %v1562_v19  ;;  %1465 = vmatmul.mubr.msk.bf16.gmra.mrb[28].mxu1 %vm577_vm1, %v1563_v20 }
  0x5a   : > { %1392 = vmatprep.mubr.msk.bf16.mxu0 %vm1610_vm0, %v1609_v0  ;;  %1468 = vmatprep.mubr.msk.bf16.mxu1 %vm1610_vm0, %v1609_v0 }
  0x61   : > { %1393 = vmatmul.mubr.msk.bf16.gmra.mrb[32].mxu0 %vm577_vm1, %v1564_v21  ;;  %1469 = vmatmul.mubr.msk.bf16.gmra.mrb[32].mxu1 %vm577_vm1, %v1565_v22 }
  0x62   : > { %1396 = vmatprep.mubr.msk.bf16.mxu0 %vm1610_vm0, %v1609_v0  ;;  %1472 = vmatprep.mubr.msk.bf16.mxu1 %vm1610_vm0, %v1609_v0 }
  0x69   : > { %1397 = vmatmul.mubr.msk.bf16.gmra.mrb[36].mxu0 %vm577_vm1, %v1566_v23  ;;  %1473 = vmatmul.mubr.msk.bf16.gmra.mrb[36].mxu1 %vm577_vm1, %v1567_v24 }
  0x6a   : > { %1400 = vmatprep.mubr.msk.bf16.mxu0 %vm1610_vm0, %v1609_v0  ;;  %1476 = vmatprep.mubr.msk.bf16.mxu1 %vm1610_vm0, %v1609_v0 }
  0x71   : > { %1401 = vmatmul.mubr.msk.bf16.gmra.mrb[40].mxu0 %vm577_vm1, %v1568_v25  ;;  %1477 = vmatmul.mubr.msk.bf16.gmra.mrb[40].mxu1 %vm577_vm1, %v1569_v26 }
  0x72   : > { %1404 = vmatprep.mubr.msk.bf16.mxu0 %vm1610_vm0, %v1609_v0  ;;  %1480 = vmatprep.mubr.msk.bf16.mxu1 %vm1610_vm0, %v1609_v0 }
  0x79   : > { %1405 = vmatmul.mubr.msk.bf16.gmra.mrb[44].mxu0 %vm577_vm1, %v1570_v27  ;;  %1481 = vmatmul.mubr.msk.bf16.gmra.mrb[44].mxu1 %vm577_vm1, %v1571_v28 }
  0x7a   : > { %1408 = vmatprep.mubr.msk.bf16.mxu0 %vm1610_vm0, %v1609_v0  ;;  %1484 = vmatprep.mubr.msk.bf16.mxu1 %vm1610_vm0, %v1609_v0 }
  0x81   : > { %1409 = vmatmul.mubr.msk.bf16.gmra.mrb[48].mxu0 %vm577_vm1, %v1572_v29  ;;  %1485 = vmatmul.mubr.msk.bf16.gmra.mrb[48].mxu1 %vm577_vm1, %v1573_v30 }
  0x82   : > { %1412 = vmatprep.mubr.msk.bf16.mxu0 %vm1610_vm0, %v1609_v0  ;;  %1488 = vmatprep.mubr.msk.bf16.mxu1 %vm1610_vm0, %v1609_v0 }
  0x89   : > { %1413 = vmatmul.mubr.msk.bf16.gmra.mrb[52].mxu0 %vm577_vm1, %v1574_v31  ;;  %1489 = vmatmul.mubr.msk.bf16.gmra.mrb[52].mxu1 %vm577_vm1, %v1575_v32 }
  0x8a   : > { %1416 = vmatprep.mubr.msk.bf16.mxu0 %vm1610_vm0, %v1609_v0  ;;  %1492 = vmatprep.mubr.msk.bf16.mxu1 %vm1610_vm0, %v1609_v0 }
  0x91   : > { %1417 = vmatmul.mubr.msk.bf16.gmra.mrb[56].mxu0 %vm577_vm1, %v1576_v33  ;;  %1493 = vmatmul.mubr.msk.bf16.gmra.mrb[56].mxu1 %vm577_vm1, %v1577_v34 }
  0x92   : > { %1420 = vmatprep.mubr.msk.bf16.mxu0 %vm1610_vm0, %v1609_v0  ;;  %1496 = vmatprep.mubr.msk.bf16.mxu1 %vm1610_vm0, %v1609_v0 }
  0x99   : > { %1421 = vmatmul.mubr.msk.bf16.gmra.mrb[60].mxu0 %vm577_vm1, %v1578_v35  ;;  %1497 = vmatmul.mubr.msk.bf16.gmra.mrb[60].mxu1 %vm577_vm1, %v1579_v36 }
  0x9a   : > { %1424 = vmatprep.mubr.msk.bf16.mxu0 %vm1610_vm0, %v1609_v0  ;;  %1500 = vmatprep.mubr.msk.bf16.mxu1 %vm1610_vm0, %v1609_v0 }
  0xa1   : > { %1425 = vmatmul.mubr.msk.bf16.gmra.mrb[64].mxu0 %vm577_vm1, %v1580_v37  ;;  %1501 = vmatmul.mubr.msk.bf16.gmra.mrb[64].mxu1 %vm577_vm1, %v1581_v38 }
  0xa2   : > { %1428 = vmatprep.mubr.msk.bf16.mxu0 %vm1610_vm0, %v1609_v0  ;;  %1504 = vmatprep.mubr.msk.bf16.mxu1 %vm1610_vm0, %v1609_v0 }
  0xa9   : > { %1429 = vmatmul.mubr.msk.bf16.gmra.mrb[68].mxu0 %vm577_vm1, %v1582_v39  ;;  %1505 = vmatmul.mubr.msk.bf16.gmra.mrb[68].mxu1 %vm577_vm1, %v1583_v40 }
  0xaa   : > { %1432 = vmatprep.mubr.msk.bf16.mxu0 %vm1610_vm0, %v1609_v0 }
  0xb1   : > { %1433 = vmatmul.mubr.msk.bf16.gmra.mrb[72].mxu0 %vm577_vm1, %v1584_v41 }
  0xf4   : > { %v723_v43 = vpop.f32.mrb[0].mxu0  ;;  %v875_v44 = vpop.f32.mrb[0].mxu1 }
  0xf5   : > { %v724_v45 = vadd.f32 %v1822_v42, %v723_v43  ;;  %v1362_v46 = vpop.f32.mrb[1].mxu0  ;;  %v876_v47 = vadd.f32 %v1822_v42, %v875_v44  ;;  %v1438_v48 = vpop.f32.mrb[1].mxu1 }
  0xf6   : > { %v726_v49 = vpop.f32.mrb[2].mxu0  ;;  %v878_v50 = vpop.f32.mrb[2].mxu1 }
  0xf7   : > { %1017 = vst [vmem:[%s1827_s30] sm:$0xff] %v724_v45  ;;  %v727_v51 = vadd.f32 %v1822_v42, %v726_v49  ;;  %v1363_v52 = vpop.f32.mrb[3].mxu0  ;;  %1055 = vst [vmem:[%s1827_s30 + $0x130] sm:$0xff] %v876_v47  ;;  %v879_v53 = vadd.f32 %v1822_v42, %v878_v50  ;;  %v1439_v54 = vpop.f32.mrb[3].mxu1 }
  0xf9   : > { %1018 = vst [vmem:[%s1827_s30 + $0x8] sm:$0xff] %v727_v51  ;;  %1056 = vst [vmem:[%s1827_s30 + $0x138] sm:$0xff] %v879_v53 }
  0xfc   : > { %v731_v55 = vpop.f32.mrb[4].mxu0  ;;  %v883_v56 = vpop.f32.mrb[4].mxu1 }
  0xfd   : > { %v732_v57 = vadd.f32 %v1822_v42, %v731_v55  ;;  %v1366_v58 = vpop.f32.mrb[5].mxu0  ;;  %v884_v59 = vadd.f32 %v1822_v42, %v883_v56  ;;  %v1442_v60 = vpop.f32.mrb[5].mxu1 }
  0xfe   : > { %v734_v61 = vpop.f32.mrb[6].mxu0  ;;  %v886_v62 = vpop.f32.mrb[6].mxu1 }
  0xff   : > { %1019 = vst [vmem:[%s1827_s30 + $0x10] sm:$0xff] %v732_v57  ;;  %v735_v63 = vadd.f32 %v1822_v42, %v734_v61  ;;  %v1367_v0 = vpop.f32.mrb[7].mxu0  ;;  %1057 = vst [vmem:[%s1827_s30 + $0x140] sm:$0xff] %v884_v59  ;;  %v887_v1 = vadd.f32 %v1822_v42, %v886_v62  ;;  %v1443_v2 = vpop.f32.mrb[7].mxu1 }
 0x101   : > { %1020 = vst [vmem:[%s1827_s30 + $0x18] sm:$0xff] %v735_v63  ;;  %1058 = vst [vmem:[%s1827_s30 + $0x148] sm:$0xff] %v887_v1 }
 0x104   : > { %v739_v3 = vpop.f32.mrb[8].mxu0  ;;  %v891_v4 = vpop.f32.mrb[8].mxu1 }
 0x105   : > { %v740_v5 = vadd.f32 %v1822_v42, %v739_v3  ;;  %v1370_v6 = vpop.f32.mrb[9].mxu0  ;;  %v892_v7 = vadd.f32 %v1822_v42, %v891_v4  ;;  %v1446_v8 = vpop.f32.mrb[9].mxu1 }
 0x106   : > { %v742_v9 = vpop.f32.mrb[10].mxu0  ;;  %v894_v10 = vpop.f32.mrb[10].mxu1 }
 0x107   : > { %1021 = vst [vmem:[%s1827_s30 + $0x20] sm:$0xff] %v740_v5  ;;  %v743_v11 = vadd.f32 %v1822_v42, %v742_v9  ;;  %v1371_v12 = vpop.f32.mrb[11].mxu0  ;;  %1059 = vst [vmem:[%s1827_s30 + $0x150] sm:$0xff] %v892_v7  ;;  %v895_v13 = vadd.f32 %v1822_v42, %v894_v10  ;;  %v1447_v14 = vpop.f32.mrb[11].mxu1 }
 0x109   : > { %1022 = vst [vmem:[%s1827_s30 + $0x28] sm:$0xff] %v743_v11  ;;  %1060 = vst [vmem:[%s1827_s30 + $0x158] sm:$0xff] %v895_v13 }
 0x10c   : > { %v747_v15 = vpop.f32.mrb[12].mxu0  ;;  %v899_v16 = vpop.f32.mrb[12].mxu1 }
 0x10d   : > { %v748_v17 = vadd.f32 %v1822_v42, %v747_v15  ;;  %v1374_v18 = vpop.f32.mrb[13].mxu0  ;;  %v900_v19 = vadd.f32 %v1822_v42, %v899_v16  ;;  %v1450_v20 = vpop.f32.mrb[13].mxu1 }
 0x10e   : > { %v750_v21 = vpop.f32.mrb[14].mxu0  ;;  %v902_v22 = vpop.f32.mrb[14].mxu1 }
 0x10f   : > { %1023 = vst [vmem:[%s1827_s30 + $0x30] sm:$0xff] %v748_v17  ;;  %v751_v23 = vadd.f32 %v1822_v42, %v750_v21  ;;  %v1375_v24 = vpop.f32.mrb[15].mxu0  ;;  %1061 = vst [vmem:[%s1827_s30 + $0x160] sm:$0xff] %v900_v19  ;;  %v903_v25 = vadd.f32 %v1822_v42, %v902_v22  ;;  %v1451_v26 = vpop.f32.mrb[15].mxu1 }
 0x111   : > { %1024 = vst [vmem:[%s1827_s30 + $0x38] sm:$0xff] %v751_v23  ;;  %1062 = vst [vmem:[%s1827_s30 + $0x168] sm:$0xff] %v903_v25 }
 0x114   : > { %v755_v27 = vpop.f32.mrb[16].mxu0  ;;  %v907_v28 = vpop.f32.mrb[16].mxu1 }
 0x115   : > { %v756_v29 = vadd.f32 %v1822_v42, %v755_v27  ;;  %v1378_v30 = vpop.f32.mrb[17].mxu0  ;;  %v908_v31 = vadd.f32 %v1822_v42, %v907_v28  ;;  %v1454_v32 = vpop.f32.mrb[17].mxu1 }
 0x116   : > { %v758_v33 = vpop.f32.mrb[18].mxu0  ;;  %v910_v34 = vpop.f32.mrb[18].mxu1 }
 0x117   : > { %1025 = vst [vmem:[%s1827_s30 + $0x40] sm:$0xff] %v756_v29  ;;  %v759_v35 = vadd.f32 %v1822_v42, %v758_v33  ;;  %v1379_v36 = vpop.f32.mrb[19].mxu0  ;;  %1063 = vst [vmem:[%s1827_s30 + $0x170] sm:$0xff] %v908_v31  ;;  %v911_v37 = vadd.f32 %v1822_v42, %v910_v34  ;;  %v1455_v38 = vpop.f32.mrb[19].mxu1 }
 0x119   : > { %1026 = vst [vmem:[%s1827_s30 + $0x48] sm:$0xff] %v759_v35  ;;  %1064 = vst [vmem:[%s1827_s30 + $0x178] sm:$0xff] %v911_v37 }
 0x11c   : > { %v763_v39 = vpop.f32.mrb[20].mxu0  ;;  %v915_v40 = vpop.f32.mrb[20].mxu1 }
 0x11d   : > { %v764_v41 = vadd.f32 %v1822_v42, %v763_v39  ;;  %v1382_v43 = vpop.f32.mrb[21].mxu0  ;;  %v916_v44 = vadd.f32 %v1822_v42, %v915_v40  ;;  %v1458_v45 = vpop.f32.mrb[21].mxu1 }
 0x11e   : > { %v766_v46 = vpop.f32.mrb[22].mxu0  ;;  %v918_v47 = vpop.f32.mrb[22].mxu1 }
 0x11f   : > { %1027 = vst [vmem:[%s1827_s30 + $0x50] sm:$0xff] %v764_v41  ;;  %v767_v48 = vadd.f32 %v1822_v42, %v766_v46  ;;  %v1383_v49 = vpop.f32.mrb[23].mxu0  ;;  %1065 = vst [vmem:[%s1827_s30 + $0x180] sm:$0xff] %v916_v44  ;;  %v919_v50 = vadd.f32 %v1822_v42, %v918_v47  ;;  %v1459_v51 = vpop.f32.mrb[23].mxu1 }
 0x121   : > { %1028 = vst [vmem:[%s1827_s30 + $0x58] sm:$0xff] %v767_v48  ;;  %1066 = vst [vmem:[%s1827_s30 + $0x188] sm:$0xff] %v919_v50 }
 0x124   : > { %v771_v52 = vpop.f32.mrb[24].mxu0  ;;  %v923_v53 = vpop.f32.mrb[24].mxu1 }
 0x125   : > { %v772_v54 = vadd.f32 %v1822_v42, %v771_v52  ;;  %v1386_v55 = vpop.f32.mrb[25].mxu0  ;;  %v924_v56 = vadd.f32 %v1822_v42, %v923_v53  ;;  %v1462_v57 = vpop.f32.mrb[25].mxu1 }
 0x126   : > { %v774_v58 = vpop.f32.mrb[26].mxu0  ;;  %v926_v59 = vpop.f32.mrb[26].mxu1 }
 0x127   : > { %1029 = vst [vmem:[%s1827_s30 + $0x60] sm:$0xff] %v772_v54  ;;  %v775_v60 = vadd.f32 %v1822_v42, %v774_v58  ;;  %v1387_v61 = vpop.f32.mrb[27].mxu0  ;;  %1067 = vst [vmem:[%s1827_s30 + $0x190] sm:$0xff] %v924_v56  ;;  %v927_v62 = vadd.f32 %v1822_v42, %v926_v59  ;;  %v1463_v63 = vpop.f32.mrb[27].mxu1 }
 0x129   : > { %1030 = vst [vmem:[%s1827_s30 + $0x68] sm:$0xff] %v775_v60  ;;  %1068 = vst [vmem:[%s1827_s30 + $0x198] sm:$0xff] %v927_v62 }
 0x12c   : > { %v779_v0 = vpop.f32.mrb[28].mxu0  ;;  %v931_v1 = vpop.f32.mrb[28].mxu1 }
 0x12d   : > { %v780_v2 = vadd.f32 %v1822_v42, %v779_v0  ;;  %v1390_v3 = vpop.f32.mrb[29].mxu0  ;;  %v932_v4 = vadd.f32 %v1822_v42, %v931_v1  ;;  %v1466_v5 = vpop.f32.mrb[29].mxu1 }
 0x12e   : > { %v782_v6 = vpop.f32.mrb[30].mxu0  ;;  %v934_v7 = vpop.f32.mrb[30].mxu1 }
 0x12f   : > { %1031 = vst [vmem:[%s1827_s30 + $0x70] sm:$0xff] %v780_v2  ;;  %v783_v8 = vadd.f32 %v1822_v42, %v782_v6  ;;  %v1391_v9 = vpop.f32.mrb[31].mxu0  ;;  %1069 = vst [vmem:[%s1827_s30 + $0x1a0] sm:$0xff] %v932_v4  ;;  %v935_v10 = vadd.f32 %v1822_v42, %v934_v7  ;;  %v1467_v11 = vpop.f32.mrb[31].mxu1 }
 0x131   : > { %1032 = vst [vmem:[%s1827_s30 + $0x78] sm:$0xff] %v783_v8  ;;  %1070 = vst [vmem:[%s1827_s30 + $0x1a8] sm:$0xff] %v935_v10 }
 0x134   : > { %v787_v12 = vpop.f32.mrb[32].mxu0  ;;  %v939_v13 = vpop.f32.mrb[32].mxu1 }
 0x135   : > { %v788_v14 = vadd.f32 %v1822_v42, %v787_v12  ;;  %v1394_v15 = vpop.f32.mrb[33].mxu0  ;;  %v940_v16 = vadd.f32 %v1822_v42, %v939_v13  ;;  %v1470_v17 = vpop.f32.mrb[33].mxu1 }
 0x136   : > { %v790_v18 = vpop.f32.mrb[34].mxu0  ;;  %v942_v19 = vpop.f32.mrb[34].mxu1 }
 0x137   : > { %1033 = vst [vmem:[%s1827_s30 + $0x80] sm:$0xff] %v788_v14  ;;  %v791_v20 = vadd.f32 %v1822_v42, %v790_v18  ;;  %v1395_v21 = vpop.f32.mrb[35].mxu0  ;;  %1071 = vst [vmem:[%s1827_s30 + $0x1b0] sm:$0xff] %v940_v16  ;;  %v943_v22 = vadd.f32 %v1822_v42, %v942_v19  ;;  %v1471_v23 = vpop.f32.mrb[35].mxu1 }
 0x139   : > { %1034 = vst [vmem:[%s1827_s30 + $0x88] sm:$0xff] %v791_v20  ;;  %1072 = vst [vmem:[%s1827_s30 + $0x1b8] sm:$0xff] %v943_v22 }
 0x13c   : > { %v795_v24 = vpop.f32.mrb[36].mxu0  ;;  %v947_v25 = vpop.f32.mrb[36].mxu1 }
 0x13d   : > { %v796_v26 = vadd.f32 %v1822_v42, %v795_v24  ;;  %v1398_v27 = vpop.f32.mrb[37].mxu0  ;;  %v948_v28 = vadd.f32 %v1822_v42, %v947_v25  ;;  %v1474_v29 = vpop.f32.mrb[37].mxu1 }
 0x13e   : > { %v798_v30 = vpop.f32.mrb[38].mxu0  ;;  %v950_v31 = vpop.f32.mrb[38].mxu1 }
 0x13f   : > { %1035 = vst [vmem:[%s1827_s30 + $0x90] sm:$0xff] %v796_v26  ;;  %v799_v32 = vadd.f32 %v1822_v42, %v798_v30  ;;  %v1399_v33 = vpop.f32.mrb[39].mxu0  ;;  %1073 = vst [vmem:[%s1827_s30 + $0x1c0] sm:$0xff] %v948_v28  ;;  %v951_v34 = vadd.f32 %v1822_v42, %v950_v31  ;;  %v1475_v35 = vpop.f32.mrb[39].mxu1 }
 0x141   : > { %1036 = vst [vmem:[%s1827_s30 + $0x98] sm:$0xff] %v799_v32  ;;  %1074 = vst [vmem:[%s1827_s30 + $0x1c8] sm:$0xff] %v951_v34 }
 0x144   : > { %v803_v36 = vpop.f32.mrb[40].mxu0  ;;  %v955_v37 = vpop.f32.mrb[40].mxu1 }
 0x145   : > { %v804_v38 = vadd.f32 %v1822_v42, %v803_v36  ;;  %v1402_v39 = vpop.f32.mrb[41].mxu0  ;;  %v956_v40 = vadd.f32 %v1822_v42, %v955_v37  ;;  %v1478_v41 = vpop.f32.mrb[41].mxu1 }
 0x146   : > { %v806_v43 = vpop.f32.mrb[42].mxu0  ;;  %v958_v44 = vpop.f32.mrb[42].mxu1 }
 0x147   : > { %1037 = vst [vmem:[%s1827_s30 + $0xa0] sm:$0xff] %v804_v38  ;;  %v807_v45 = vadd.f32 %v1822_v42, %v806_v43  ;;  %v1403_v46 = vpop.f32.mrb[43].mxu0  ;;  %1075 = vst [vmem:[%s1827_s30 + $0x1d0] sm:$0xff] %v956_v40  ;;  %v959_v47 = vadd.f32 %v1822_v42, %v958_v44  ;;  %v1479_v48 = vpop.f32.mrb[43].mxu1 }
 0x149   : > { %1038 = vst [vmem:[%s1827_s30 + $0xa8] sm:$0xff] %v807_v45  ;;  %1076 = vst [vmem:[%s1827_s30 + $0x1d8] sm:$0xff] %v959_v47 }
 0x14c   : > { %v811_v49 = vpop.f32.mrb[44].mxu0  ;;  %v963_v50 = vpop.f32.mrb[44].mxu1 }
 0x14d   : > { %v812_v51 = vadd.f32 %v1822_v42, %v811_v49  ;;  %v1406_v52 = vpop.f32.mrb[45].mxu0  ;;  %v964_v53 = vadd.f32 %v1822_v42, %v963_v50  ;;  %v1482_v54 = vpop.f32.mrb[45].mxu1 }
 0x14e   : > { %v814_v55 = vpop.f32.mrb[46].mxu0  ;;  %v966_v56 = vpop.f32.mrb[46].mxu1 }
 0x14f   : > { %1039 = vst [vmem:[%s1827_s30 + $0xb0] sm:$0xff] %v812_v51  ;;  %v815_v57 = vadd.f32 %v1822_v42, %v814_v55  ;;  %v1407_v58 = vpop.f32.mrb[47].mxu0  ;;  %1077 = vst [vmem:[%s1827_s30 + $0x1e0] sm:$0xff] %v964_v53  ;;  %v967_v59 = vadd.f32 %v1822_v42, %v966_v56  ;;  %v1483_v60 = vpop.f32.mrb[47].mxu1 }
 0x151   : > { %1040 = vst [vmem:[%s1827_s30 + $0xb8] sm:$0xff] %v815_v57  ;;  %1078 = vst [vmem:[%s1827_s30 + $0x1e8] sm:$0xff] %v967_v59 }
 0x154   : > { %v819_v61 = vpop.f32.mrb[48].mxu0  ;;  %v971_v62 = vpop.f32.mrb[48].mxu1 }
 0x155   : > { %v820_v63 = vadd.f32 %v1822_v42, %v819_v61  ;;  %v1410_v0 = vpop.f32.mrb[49].mxu0  ;;  %v972_v1 = vadd.f32 %v1822_v42, %v971_v62  ;;  %v1486_v2 = vpop.f32.mrb[49].mxu1 }
 0x156   : > { %v822_v3 = vpop.f32.mrb[50].mxu0  ;;  %v974_v4 = vpop.f32.mrb[50].mxu1 }
 0x157   : > { %1041 = vst [vmem:[%s1827_s30 + $0xc0] sm:$0xff] %v820_v63  ;;  %v823_v5 = vadd.f32 %v1822_v42, %v822_v3  ;;  %v1411_v6 = vpop.f32.mrb[51].mxu0  ;;  %1079 = vst [vmem:[%s1827_s30 + $0x1f0] sm:$0xff] %v972_v1  ;;  %v975_v7 = vadd.f32 %v1822_v42, %v974_v4  ;;  %v1487_v8 = vpop.f32.mrb[51].mxu1 }
 0x159   : > { %1042 = vst [vmem:[%s1827_s30 + $0xc8] sm:$0xff] %v823_v5  ;;  %1080 = vst [vmem:[%s1827_s30 + $0x1f8] sm:$0xff] %v975_v7 }
 0x15c   : > { %v827_v9 = vpop.f32.mrb[52].mxu0  ;;  %v979_v10 = vpop.f32.mrb[52].mxu1 }
 0x15d   : > { %v828_v11 = vadd.f32 %v1822_v42, %v827_v9  ;;  %v1414_v12 = vpop.f32.mrb[53].mxu0  ;;  %v980_v13 = vadd.f32 %v1822_v42, %v979_v10  ;;  %v1490_v14 = vpop.f32.mrb[53].mxu1 }
 0x15e   : > { %v830_v15 = vpop.f32.mrb[54].mxu0  ;;  %v982_v16 = vpop.f32.mrb[54].mxu1 }
 0x15f   : > { %1043 = vst [vmem:[%s1827_s30 + $0xd0] sm:$0xff] %v828_v11  ;;  %v831_v17 = vadd.f32 %v1822_v42, %v830_v15  ;;  %v1415_v18 = vpop.f32.mrb[55].mxu0  ;;  %1081 = vst [vmem:[%s1827_s30 + $0x200] sm:$0xff] %v980_v13  ;;  %v983_v19 = vadd.f32 %v1822_v42, %v982_v16  ;;  %v1491_v20 = vpop.f32.mrb[55].mxu1 }
 0x161   : > { %1044 = vst [vmem:[%s1827_s30 + $0xd8] sm:$0xff] %v831_v17  ;;  %1082 = vst [vmem:[%s1827_s30 + $0x208] sm:$0xff] %v983_v19 }
 0x164   : > { %v835_v21 = vpop.f32.mrb[56].mxu0  ;;  %v987_v22 = vpop.f32.mrb[56].mxu1 }
 0x165   : > { %v836_v23 = vadd.f32 %v1822_v42, %v835_v21  ;;  %v1418_v24 = vpop.f32.mrb[57].mxu0  ;;  %v988_v25 = vadd.f32 %v1822_v42, %v987_v22  ;;  %v1494_v26 = vpop.f32.mrb[57].mxu1 }
 0x166   : > { %v838_v27 = vpop.f32.mrb[58].mxu0  ;;  %v990_v28 = vpop.f32.mrb[58].mxu1 }
 0x167   : > { %1045 = vst [vmem:[%s1827_s30 + $0xe0] sm:$0xff] %v836_v23  ;;  %v839_v29 = vadd.f32 %v1822_v42, %v838_v27  ;;  %v1419_v30 = vpop.f32.mrb[59].mxu0  ;;  %1083 = vst [vmem:[%s1827_s30 + $0x210] sm:$0xff] %v988_v25  ;;  %v991_v31 = vadd.f32 %v1822_v42, %v990_v28  ;;  %v1495_v32 = vpop.f32.mrb[59].mxu1 }
 0x169   : > { %1046 = vst [vmem:[%s1827_s30 + $0xe8] sm:$0xff] %v839_v29  ;;  %1084 = vst [vmem:[%s1827_s30 + $0x218] sm:$0xff] %v991_v31 }
 0x16c   : > { %v843_v33 = vpop.f32.mrb[60].mxu0  ;;  %v995_v34 = vpop.f32.mrb[60].mxu1 }
 0x16d   : > { %v844_v35 = vadd.f32 %v1822_v42, %v843_v33  ;;  %v1422_v36 = vpop.f32.mrb[61].mxu0  ;;  %v996_v37 = vadd.f32 %v1822_v42, %v995_v34  ;;  %v1498_v38 = vpop.f32.mrb[61].mxu1 }
 0x16e   : > { %v846_v39 = vpop.f32.mrb[62].mxu0  ;;  %v998_v40 = vpop.f32.mrb[62].mxu1 }
 0x16f   : > { %1047 = vst [vmem:[%s1827_s30 + $0xf0] sm:$0xff] %v844_v35  ;;  %v847_v41 = vadd.f32 %v1822_v42, %v846_v39  ;;  %v1423_v43 = vpop.f32.mrb[63].mxu0  ;;  %1085 = vst [vmem:[%s1827_s30 + $0x220] sm:$0xff] %v996_v37  ;;  %v999_v44 = vadd.f32 %v1822_v42, %v998_v40  ;;  %v1499_v45 = vpop.f32.mrb[63].mxu1 }
 0x171   : > { %1048 = vst [vmem:[%s1827_s30 + $0xf8] sm:$0xff] %v847_v41  ;;  %1086 = vst [vmem:[%s1827_s30 + $0x228] sm:$0xff] %v999_v44 }
 0x174   : > { %v851_v46 = vpop.f32.mrb[64].mxu0  ;;  %v1003_v47 = vpop.f32.mrb[64].mxu1 }
 0x175   : > { %v852_v48 = vadd.f32 %v1822_v42, %v851_v46  ;;  %v1426_v49 = vpop.f32.mrb[65].mxu0  ;;  %v1004_v50 = vadd.f32 %v1822_v42, %v1003_v47  ;;  %v1502_v51 = vpop.f32.mrb[65].mxu1 }
 0x176   : > { %v854_v52 = vpop.f32.mrb[66].mxu0  ;;  %v1006_v53 = vpop.f32.mrb[66].mxu1 }
 0x177   : > { %1049 = vst [vmem:[%s1827_s30 + $0x100] sm:$0xff] %v852_v48  ;;  %v855_v54 = vadd.f32 %v1822_v42, %v854_v52  ;;  %v1427_v55 = vpop.f32.mrb[67].mxu0  ;;  %1087 = vst [vmem:[%s1827_s30 + $0x230] sm:$0xff] %v1004_v50  ;;  %v1007_v56 = vadd.f32 %v1822_v42, %v1006_v53  ;;  %v1503_v57 = vpop.f32.mrb[67].mxu1 }
 0x179   : > { %1050 = vst [vmem:[%s1827_s30 + $0x108] sm:$0xff] %v855_v54  ;;  %1088 = vst [vmem:[%s1827_s30 + $0x238] sm:$0xff] %v1007_v56 }
 0x17c   : > { %v859_v58 = vpop.f32.mrb[68].mxu0  ;;  %v1011_v59 = vpop.f32.mrb[68].mxu1 }
 0x17d   : > { %v860_v60 = vadd.f32 %v1822_v42, %v859_v58  ;;  %v1430_v61 = vpop.f32.mrb[69].mxu0  ;;  %v1012_v62 = vadd.f32 %v1822_v42, %v1011_v59  ;;  %v1506_v63 = vpop.f32.mrb[69].mxu1 }
 0x17e   : > { %v862_v0 = vpop.f32.mrb[70].mxu0  ;;  %v1014_v1 = vpop.f32.mrb[70].mxu1 }
 0x17f   : > { %1051 = vst [vmem:[%s1827_s30 + $0x110] sm:$0xff] %v860_v60  ;;  %v863_v2 = vadd.f32 %v1822_v42, %v862_v0  ;;  %v1431_v3 = vpop.f32.mrb[71].mxu0  ;;  %1089 = vst [vmem:[%s1827_s30 + $0x240] sm:$0xff] %v1012_v62  ;;  %v1507_v4 = vpop.f32.mrb[71].mxu1 }
 0x181   : > { %1052 = vst [vmem:[%s1827_s30 + $0x118] sm:$0xff] %v863_v2 }
 0x184   : > { %v867_v5 = vpop.f32.mrb[72].mxu0 }
 0x185   : > { %v868_v6 = vadd.f32 %v1822_v42, %v867_v5  ;;  %v1434_v7 = vpop.f32.mrb[73].mxu0 }
 0x186   : > { %v870_v8 = vpop.f32.mrb[74].mxu0 }
 0x187   : > { %1053 = vst [vmem:[%s1827_s30 + $0x120] sm:$0xff] %v868_v6  ;;  %v871_v9 = vadd.f32 %v1822_v42, %v870_v8  ;;  %v1435_v10 = vpop.f32.mrb[75].mxu0 }
 0x189   : > { %1054 = vst [vmem:[%s1827_s30 + $0x128] sm:$0xff] %v871_v9 }
 0x18a PF: > { %s13_s14 = sadd.s32 1, %s1607_s14   ;;  %s1988_s12 = smov %s1603_s13 }
 0x18b   : > { %p10_p5 = scmp.ge.s32.totalorder %s13_s14, 4   ;;  %s1989_s13 = smov %s1991_s15 }
 0x18d   :  { %12 = sbr.rel (!%p10_p5) target bundleno = 2 (0x2), region = 68 }

</bundles_post_ra>
